<compile_context>
chip_gen: v5e
topology: v5e:2x2
jax: 0.10.0
libtpu: 0.0.40
codegen_flags: <defaults>
</compile_context>

<pallas_src>
import functools

import jax
import jax.numpy as jnp
from jax.experimental import pallas as pl
from jax.experimental.pallas import tpu as pltpu


_LANES = 128
_VMEM = pl.BlockSpec(memory_space=pltpu.MemorySpace.VMEM)
_SMEM = pl.BlockSpec(memory_space=pltpu.MemorySpace.SMEM)


# ---------------------------------------------------------------------------
# Padding helpers (zero padding is exact for this model: padded h columns stay
# zero through every layer because padded weight columns / bias entries are 0).
# ---------------------------------------------------------------------------
def _pad_cols(a, m=_LANES):
    pad = (-a.shape[-1]) % m
    if pad:
        a = jnp.pad(a, [(0, 0)] * (a.ndim - 1) + [(0, pad)])
    return a.astype(jnp.float32)


def _pad_mat(w, m=_LANES):
    r = (-w.shape[0]) % m
    c = (-w.shape[1]) % m
    return jnp.pad(w.astype(jnp.float32), ((0, r), (0, c)))


# ---------------------------------------------------------------------------
# Kernels
# ---------------------------------------------------------------------------
def _make_sage_layer_kernel(relu):
    """One SAGEConv('mean') layer, row-tiled over destination rows."""

    def kernel(adj_ref, dinv_ref, h_tile_ref, h_full_ref,
               w_self_ref, w_neigh_ref, b_ref, out_ref):
        # adjacency row-tile: 0/1 int8 -> f32 (exact), aggregation in f32
        adj = adj_ref[...].astype(jnp.float32)                    # (tm, N)
        agg = jnp.dot(adj, h_full_ref[...],
                      preferred_element_type=jnp.float32)         # (tm, F)
        agg = agg * dinv_ref[...]                                  # mean = (A @ h) / deg
        out = (jnp.dot(h_tile_ref[...], w_self_ref[...],
                       preferred_element_type=jnp.float32)
               + jnp.dot(agg, w_neigh_ref[...],
                         preferred_element_type=jnp.float32)
               + b_ref[...])
        if relu:
            out = jnp.maximum(out, 0.0)
        out_ref[...] = out                                         # lane-dense store

    return kernel


def _predictor_kernel(x_ref, w1t_ref, b1_ref, w2t_ref, b2_ref, w3d_ref,
                      b3d_ref, score_ref):
    """Edge-score MLP in feature-major layout: edges on lanes (lane-dense)."""
    x = x_ref[...]                                                 # (H, 2E) f32
    a = jnp.dot(w1t_ref[...], x, preferred_element_type=jnp.float32) + b1_ref[...]
    a = jnp.maximum(a, 0.0)
    a = jnp.dot(w2t_ref[...], a, preferred_element_type=jnp.float32) + b2_ref[...]
    a = jnp.maximum(a, 0.0)
    # softmax([l0, l1])[:, 1] == sigmoid(l1 - l0); exact sigmoid (calibrated probs)
    z = jnp.dot(w3d_ref[...], a, preferred_element_type=jnp.float32) + b3d_ref[0, 0]
    score_ref[...] = 1.0 / (1.0 + jnp.exp(-z))                     # (1, 2E)


# ---------------------------------------------------------------------------
# Wrappers
# ---------------------------------------------------------------------------
def graphsage_embed(adj01_i8, deg_inv, x, sage_params, *, tile_rows=128):
    """3 row-tiled SAGEConv layers. Returns padded node embeddings (N, H_pad) f32."""
    n = x.shape[0]
    tm = tile_rows if (n % tile_rows == 0) else n
    h = _pad_cols(x)                                               # (N, F_pad) f32

    for li, (w_self, w_neigh, b) in enumerate(sage_params):
        w_s = _pad_mat(w_self)                                     # (F_pad, H_pad)
        w_n = _pad_mat(w_neigh)
        b_p = _pad_cols(b)                                         # (1, H_pad)
        f_pad, h_pad = w_s.shape
        kernel = _make_sage_layer_kernel(relu=(li < 2))

        h = pl.pallas_call(
            kernel,
            out_shape=jax.ShapeDtypeStruct((n, h_pad), jnp.float32),
            grid=(n // tm,),
            in_specs=[
                pl.BlockSpec((tm, n), lambda i: (i, 0)),           # adj row tile (int8)
                pl.BlockSpec((tm, 1), lambda i: (i, 0)),           # 1/deg row tile
                pl.BlockSpec((tm, f_pad), lambda i: (i, 0)),       # h tile (self path)
                pl.BlockSpec((n, f_pad), lambda i: (0, 0)),        # full h (aggregation)
                pl.BlockSpec((f_pad, h_pad), lambda i: (0, 0)),    # W_self
                pl.BlockSpec((f_pad, h_pad), lambda i: (0, 0)),    # W_neigh
                pl.BlockSpec((1, h_pad), lambda i: (0, 0)),        # bias
            ],
            out_specs=pl.BlockSpec((tm, h_pad), lambda i: (i, 0)),
            compiler_params=pltpu.CompilerParams(
                dimension_semantics=("parallel",),
                vmem_limit_bytes=32 * 1024 * 1024),
        )(adj01_i8, deg_inv, h, h, w_s, w_n, b_p)
    return h


def predict_scores(h_pad, src_idx, dst_idx, pred_params):
    """Score all edges (pos + neg concatenated) with one lane-dense pallas_call."""
    w1, b1, w2, b2, w3, b3 = pred_params
    e2 = src_idx.shape[0]
    # edge gather + elementwise product + transpose are glue (plain JAX)
    x_t = (h_pad[src_idx] * h_pad[dst_idx]).T                      # (H_pad, 2E) f32
    w1t = _pad_mat(w1).T
    w2t = _pad_mat(w2).T
    b1c = _pad_cols(b1).reshape(-1, 1)                             # (H_pad, 1)
    b2c = _pad_cols(b2).reshape(-1, 1)
    w3d = _pad_cols((w3[:, 1] - w3[:, 0]).reshape(1, -1))          # (1, H_pad)
    b3d = jnp.reshape(b3[..., 1] - b3[..., 0], (1, 1)).astype(jnp.float32)

    scores = pl.pallas_call(
        _predictor_kernel,
        out_shape=jax.ShapeDtypeStruct((1, e2), jnp.float32),
        in_specs=[_VMEM, _VMEM, _VMEM, _VMEM, _VMEM, _VMEM, _SMEM],
        out_specs=_VMEM,
    )(x_t, w1t, b1c, w2t, b2c, w3d, b3d)
    return scores[0]


def graphsage_forward(adj01_i8, deg_inv, x, sage_params, pred_params,
                      pos_src, pos_dst, neg_src, neg_dst):
    h = graphsage_embed(adj01_i8, deg_inv, x, sage_params)
    src_all = jnp.concatenate([pos_src, neg_src])
    dst_all = jnp.concatenate([pos_dst, neg_dst])
    scores = predict_scores(h, src_all, dst_all, pred_params)
    e = pos_src.shape[0]
    return scores[:e], scores[e:]


# ---------------------------------------------------------------------------
# Pure-JAX f32 reference (original softmax form) for validation
# ---------------------------------------------------------------------------
def reference_forward(adj_norm, x, sage_params, pred_params,
                      pos_src, pos_dst, neg_src, neg_dst):
    h = x
    for i, (w_self, w_neigh, b) in enumerate(sage_params):
        neigh = adj_norm @ h
        h = h @ w_self + neigh @ w_neigh + b
        if i < 2:
            h = jnp.maximum(h, 0.0)
    w1, b1, w2, b2, w3, b3 = pred_params

    def predict(hs, hd):
        xe = hs * hd
        a = jnp.maximum(xe @ w1 + b1, 0.0)
        a = jnp.maximum(a @ w2 + b2, 0.0)
        logits = a @ w3 + b3
        return jax.nn.softmax(logits, axis=1)[:, 1]

    return predict(h[pos_src], h[pos_dst]), predict(h[neg_src], h[neg_dst])


# ---------------------------------------------------------------------------
# Deterministic parameter / input construction
# ---------------------------------------------------------------------------
def _glorot(key, shape):
    fan_in = shape[0]
    return (jax.random.normal(key, shape, dtype=jnp.float32)
            * (1.0 / jnp.sqrt(jnp.float32(fan_in))))


def make_params(key, in_feats, n_hidden):
    keys = jax.random.split(key, 16)
    sage_params = []
    dims = [(in_feats, n_hidden), (n_hidden, n_hidden), (n_hidden, n_hidden)]
    k = 0
    for (fi, fo) in dims:
        w_self = _glorot(keys[k], (fi, fo)); k += 1
        w_neigh = _glorot(keys[k], (fi, fo)); k += 1
        b = jnp.zeros((1, fo), jnp.float32)
        sage_params.append((w_self, w_neigh, b))
    w1 = _glorot(keys[k], (n_hidden, n_hidden)); k += 1
    b1 = jnp.zeros((1, n_hidden), jnp.float32)
    w2 = _glorot(keys[k], (n_hidden, n_hidden)); k += 1
    b2 = jnp.zeros((1, n_hidden), jnp.float32)
    w3 = _glorot(keys[k], (n_hidden, 2)); k += 1
    b3 = jnp.zeros((1, 2), jnp.float32)
    pred_params = (w1, b1, w2, b2, w3, b3)
    return sage_params, pred_params


if __name__ == "__main__":
    N = 256          # nodes (2 row-tiles of 128 -> exercises the grid/pipeline)
    IN_FEATS = 32
    N_HIDDEN = 32
    E = 64           # edges per (pos / neg) pair graph -> 2E = 128 lanes

    root = jax.random.PRNGKey(0)
    k_feat, k_adj, k_e1, k_e2, k_e3, k_e4, k_par = jax.random.split(root, 7)

    # node features
    x = jax.random.normal(k_feat, (N, IN_FEATS), dtype=jnp.float32)

    # random graph: store UNNORMALIZED 0/1 adjacency in int8; 1/deg as f32 column
    adj01 = (jax.random.uniform(k_adj, (N, N)) < 0.05).astype(jnp.int8)
    deg = jnp.maximum(adj01.astype(jnp.float32).sum(axis=1, keepdims=True), 1.0)
    deg_inv = (1.0 / deg).astype(jnp.float32)                      # (N, 1)
    adj_norm = adj01.astype(jnp.float32) * deg_inv                 # reference only

    # positive / negative edge endpoints
    pos_src = jax.random.randint(k_e1, (E,), 0, N)
    pos_dst = jax.random.randint(k_e2, (E,), 0, N)
    neg_src = jax.random.randint(k_e3, (E,), 0, N)
    neg_dst = jax.random.randint(k_e4, (E,), 0, N)

    sage_params, pred_params = make_params(k_par, IN_FEATS, N_HIDDEN)

    pos_score, neg_score = jax.jit(graphsage_forward)(
        adj01, deg_inv, x, sage_params, pred_params,
        pos_src, pos_dst, neg_src, neg_dst)
    jax.block_until_ready((pos_score, neg_score))

    assert pos_score.shape == (E,) and neg_score.shape == (E,)
    assert bool(jnp.all(jnp.isfinite(pos_score))) and bool(jnp.all(jnp.isfinite(neg_score)))

    # f32-kernel vs f32-reference (scores are probabilities in [0, 1])
    ref_pos, ref_neg = reference_forward(
        adj_norm, x, sage_params, pred_params, pos_src, pos_dst, neg_src, neg_dst)
    max_diff = float(jnp.maximum(jnp.max(jnp.abs(pos_score - ref_pos)),
                                 jnp.max(jnp.abs(neg_score - ref_neg))))
    assert max_diff < 1e-3, f"kernel diverged from reference: {max_diff}"

    print("KERNEL_OK")
</pallas_src>

<mosaic_0001>
module attributes {stable_mosaic.version = 11 : i64} {
  func.func @_predictor_kernel(%arg0: memref<128x128xf32, #tpu.memory_space<vmem>>, %arg1: memref<128x128xf32, #tpu.memory_space<vmem>>, %arg2: memref<128x1xf32, #tpu.memory_space<vmem>>, %arg3: memref<128x128xf32, #tpu.memory_space<vmem>>, %arg4: memref<128x1xf32, #tpu.memory_space<vmem>>, %arg5: memref<1x128xf32, #tpu.memory_space<vmem>>, %arg6: memref<1x1xf32, #tpu.memory_space<smem>>, %arg7: memref<1x128xf32, #tpu.memory_space<vmem>>) attributes {dimension_semantics = [], scalar_prefetch = 0 : i64, scratch_operands = 0 : i64, tpu.core_type = #tpu.core_type<tc>} {
    %c0 = arith.constant 0 : index
    %c0_0 = arith.constant 0 : index
    %0 = vector.load %arg0[%c0, %c0_0] : memref<128x128xf32, #tpu.memory_space<vmem>>, vector<128x128xf32>
    %c0_1 = arith.constant 0 : index
    %c0_2 = arith.constant 0 : index
    %1 = vector.load %arg1[%c0_1, %c0_2] : memref<128x128xf32, #tpu.memory_space<vmem>>, vector<128x128xf32>
    %cst = arith.constant dense<0.000000e+00> : vector<128x128xf32>
    %2 = tpu.matmul %1, %0, %cst {dimension_numbers = #tpu.dot_dimension_numbers<[1], [0], [0], [1], [0, 0, 1, 1], [], []>} : vector<128x128xf32>, vector<128x128xf32>, vector<128x128xf32> -> vector<128x128xf32>
    %c0_3 = arith.constant 0 : index
    %c0_4 = arith.constant 0 : index
    %3 = vector.load %arg2[%c0_3, %c0_4] : memref<128x1xf32, #tpu.memory_space<vmem>>, vector<128x1xf32>
    %4 = vector.broadcast %3 : vector<128x1xf32> to vector<128x128xf32>
    %5 = arith.addf %2, %4 : vector<128x128xf32>
    %cst_5 = arith.constant 0.000000e+00 : f32
    %6 = vector.broadcast %cst_5 : f32 to vector<128x128xf32>
    %7 = arith.maximumf %5, %6 : vector<128x128xf32>
    %c0_6 = arith.constant 0 : index
    %c0_7 = arith.constant 0 : index
    %8 = vector.load %arg3[%c0_6, %c0_7] : memref<128x128xf32, #tpu.memory_space<vmem>>, vector<128x128xf32>
    %cst_8 = arith.constant dense<0.000000e+00> : vector<128x128xf32>
    %9 = tpu.matmul %8, %7, %cst_8 {dimension_numbers = #tpu.dot_dimension_numbers<[1], [0], [0], [1], [0, 0, 1, 1], [], []>} : vector<128x128xf32>, vector<128x128xf32>, vector<128x128xf32> -> vector<128x128xf32>
    %c0_9 = arith.constant 0 : index
    %c0_10 = arith.constant 0 : index
    %10 = vector.load %arg4[%c0_9, %c0_10] : memref<128x1xf32, #tpu.memory_space<vmem>>, vector<128x1xf32>
    %11 = vector.broadcast %10 : vector<128x1xf32> to vector<128x128xf32>
    %12 = arith.addf %9, %11 : vector<128x128xf32>
    %cst_11 = arith.constant 0.000000e+00 : f32
    %13 = vector.broadcast %cst_11 : f32 to vector<128x128xf32>
    %14 = arith.maximumf %12, %13 : vector<128x128xf32>
    %c0_12 = arith.constant 0 : index
    %c0_13 = arith.constant 0 : index
    %15 = vector.load %arg5[%c0_12, %c0_13] : memref<1x128xf32, #tpu.memory_space<vmem>>, vector<1x128xf32>
    %cst_14 = arith.constant dense<0.000000e+00> : vector<1x128xf32>
    %16 = tpu.matmul %15, %14, %cst_14 {dimension_numbers = #tpu.dot_dimension_numbers<[1], [0], [0], [1], [0, 0, 1, 1], [], []>} : vector<1x128xf32>, vector<128x128xf32>, vector<1x128xf32> -> vector<1x128xf32>
    %c0_15 = arith.constant 0 : index
    %c0_16 = arith.constant 0 : index
    %17 = memref.load %arg6[%c0_15, %c0_16] : memref<1x1xf32, #tpu.memory_space<smem>>
    %18 = vector.broadcast %17 : f32 to vector<1x128xf32>
    %19 = arith.addf %16, %18 : vector<1x128xf32>
    %cst_17 = arith.constant 0.000000e+00 : f32
    %20 = vector.broadcast %cst_17 : f32 to vector<1x128xf32>
    %21 = arith.subf %20, %19 : vector<1x128xf32>
    %22 = math.exp %21 : vector<1x128xf32>
    %cst_18 = arith.constant 1.000000e+00 : f32
    %23 = vector.broadcast %cst_18 : f32 to vector<1x128xf32>
    %24 = arith.addf %23, %22 : vector<1x128xf32>
    %cst_19 = arith.constant 1.000000e+00 : f32
    %25 = vector.broadcast %cst_19 : f32 to vector<1x128xf32>
    %26 = arith.divf %25, %24 : vector<1x128xf32>
    %c0_20 = arith.constant 0 : index
    %c0_21 = arith.constant 0 : index
    %27 = vector.load %arg7[%c0_20, %c0_21] : memref<1x128xf32, #tpu.memory_space<vmem>>, vector<1x128xf32>
    tpu.vector_store %arg7[%c0_20, %c0_21], %26 {strides = array<i32>} : memref<1x128xf32, #tpu.memory_space<vmem>>, vector<1x128xf32>,
    return
  }
}

module attributes {stable_mosaic.version = 11 : i64} {
  func.func @kernel(%arg0: i32, %arg1: memref<128x256xi8, #tpu.memory_space<vmem>>, %arg2: memref<128x1xf32, #tpu.memory_space<vmem>>, %arg3: memref<128x128xf32, #tpu.memory_space<vmem>>, %arg4: memref<256x128xf32, #tpu.memory_space<vmem>>, %arg5: memref<128x128xf32, #tpu.memory_space<vmem>>, %arg6: memref<128x128xf32, #tpu.memory_space<vmem>>, %arg7: memref<1x128xf32, #tpu.memory_space<vmem>>, %arg8: memref<128x128xf32, #tpu.memory_space<vmem>>) attributes {dimension_semantics = [#tpu.dimension_semantics<parallel>], iteration_bounds = array<i64: 2>, scalar_prefetch = 0 : i64, scratch_operands = 0 : i64, tpu.core_type = #tpu.core_type<tc>, window_params = [{transform_indices = @transform_0, window_bounds = array<i64: 128, 256>}, {transform_indices = @transform_1, window_bounds = array<i64: 128, 1>}, {transform_indices = @transform_2, window_bounds = array<i64: 128, 128>}, {pipeline_mode = #tpu.pipeline_mode<synchronous>, transform_indices = @transform_3, window_bounds = array<i64: 256, 128>}, {pipeline_mode = #tpu.pipeline_mode<synchronous>, transform_indices = @transform_4, window_bounds = array<i64: 128, 128>}, {pipeline_mode = #tpu.pipeline_mode<synchronous>, transform_indices = @transform_5, window_bounds = array<i64: 128, 128>}, {pipeline_mode = #tpu.pipeline_mode<synchronous>, transform_indices = @transform_6, window_bounds = array<i64: 1, 128>}, {transform_indices = @transform_7, window_bounds = array<i64: 128, 128>}]} {
    %c0 = arith.constant 0 : index
    %c0_0 = arith.constant 0 : index
    %0 = vector.load %arg1[%c0, %c0_0] : memref<128x256xi8, #tpu.memory_space<vmem>>, vector<128x256xi8>
    %1 = arith.sitofp %0 : vector<128x256xi8> to vector<128x256xf32>
    %c0_1 = arith.constant 0 : index
    %c0_2 = arith.constant 0 : index
    %2 = vector.load %arg4[%c0_1, %c0_2] : memref<256x128xf32, #tpu.memory_space<vmem>>, vector<256x128xf32>
    %cst = arith.constant dense<0.000000e+00> : vector<128x128xf32>
    %3 = tpu.matmul %1, %2, %cst {dimension_numbers = #tpu.dot_dimension_numbers<[1], [0], [0], [1], [0, 0, 1, 1], [], []>} : vector<128x256xf32>, vector<256x128xf32>, vector<128x128xf32> -> vector<128x128xf32>
    %c0_3 = arith.constant 0 : index
    %c0_4 = arith.constant 0 : index
    %4 = vector.load %arg2[%c0_3, %c0_4] : memref<128x1xf32, #tpu.memory_space<vmem>>, vector<128x1xf32>
    %5 = vector.broadcast %4 : vector<128x1xf32> to vector<128x128xf32>
    %6 = arith.mulf %3, %5 : vector<128x128xf32>
    %c0_5 = arith.constant 0 : index
    %c0_6 = arith.constant 0 : index
    %7 = vector.load %arg3[%c0_5, %c0_6] : memref<128x128xf32, #tpu.memory_space<vmem>>, vector<128x128xf32>
    %c0_7 = arith.constant 0 : index
    %c0_8 = arith.constant 0 : index
    %8 = vector.load %arg5[%c0_7, %c0_8] : memref<128x128xf32, #tpu.memory_space<vmem>>, vector<128x128xf32>
    %cst_9 = arith.constant dense<0.000000e+00> : vector<128x128xf32>
    %9 = tpu.matmul %7, %8, %cst_9 {dimension_numbers = #tpu.dot_dimension_numbers<[1], [0], [0], [1], [0, 0, 1, 1], [], []>} : vector<128x128xf32>, vector<128x128xf32>, vector<128x128xf32> -> vector<128x128xf32>
    %c0_10 = arith.constant 0 : index
    %c0_11 = arith.constant 0 : index
    %10 = vector.load %arg6[%c0_10, %c0_11] : memref<128x128xf32, #tpu.memory_space<vmem>>, vector<128x128xf32>
    %cst_12 = arith.constant dense<0.000000e+00> : vector<128x128xf32>
    %11 = tpu.matmul %6, %10, %cst_12 {dimension_numbers = #tpu.dot_dimension_numbers<[1], [0], [0], [1], [0, 0, 1, 1], [], []>} : vector<128x128xf32>, vector<128x128xf32>, vector<128x128xf32> -> vector<128x128xf32>
    %12 = arith.addf %9, %11 : vector<128x128xf32>
    %c0_13 = arith.constant 0 : index
    %c0_14 = arith.constant 0 : index
    %13 = vector.load %arg7[%c0_13, %c0_14] : memref<1x128xf32, #tpu.memory_space<vmem>>, vector<1x128xf32>
    %14 = vector.broadcast %13 : vector<1x128xf32> to vector<128x128xf32>
    %15 = arith.addf %12, %14 : vector<128x128xf32>
    %c0_15 = arith.constant 0 : index
    %c0_16 = arith.constant 0 : index
    %16 = vector.load %arg8[%c0_15, %c0_16] : memref<128x128xf32, #tpu.memory_space<vmem>>, vector<128x128xf32>
    tpu.vector_store %arg8[%c0_15, %c0_16], %15 {strides = array<i32>} : memref<128x128xf32, #tpu.memory_space<vmem>>, vector<128x128xf32>,
    return
  }
  func.func @transform_0(%arg0: i32) -> (i32, i32) {
    %c0_i32 = arith.constant 0 : i32
    %c0_i32_0 = arith.constant 0 : i32
    return %arg0, %c0_i32 : i32, i32
  }
  func.func @transform_1(%arg0: i32) -> (i32, i32) {
    %c0_i32 = arith.constant 0 : i32
    %c0_i32_0 = arith.constant 0 : i32
    return %arg0, %c0_i32 : i32, i32
  }
  func.func @transform_2(%arg0: i32) -> (i32, i32) {
    %c0_i32 = arith.constant 0 : i32
    %c0_i32_0 = arith.constant 0 : i32
    return %arg0, %c0_i32 : i32, i32
  }
  func.func @transform_3(%arg0: i32) -> (i32, i32) {
    %c0_i32 = arith.constant 0 : i32
    %c0_i32_0 = arith.constant 0 : i32
    %c0_i32_1 = arith.constant 0 : i32
    return %c0_i32, %c0_i32_0 : i32, i32
  }
  func.func @transform_4(%arg0: i32) -> (i32, i32) {
    %c0_i32 = arith.constant 0 : i32
    %c0_i32_0 = arith.constant 0 : i32
    %c0_i32_1 = arith.constant 0 : i32
    return %c0_i32, %c0_i32_0 : i32, i32
  }
  func.func @transform_5(%arg0: i32) -> (i32, i32) {
    %c0_i32 = arith.constant 0 : i32
    %c0_i32_0 = arith.constant 0 : i32
    %c0_i32_1 = arith.constant 0 : i32
    return %c0_i32, %c0_i32_0 : i32, i32
  }
  func.func @transform_6(%arg0: i32) -> (i32, i32) {
    %c0_i32 = arith.constant 0 : i32
    %c0_i32_0 = arith.constant 0 : i32
    %c0_i32_1 = arith.constant 0 : i32
    return %c0_i32, %c0_i32_0 : i32, i32
  }
  func.func @transform_7(%arg0: i32) -> (i32, i32) {
    %c0_i32 = arith.constant 0 : i32
    %c0_i32_0 = arith.constant 0 : i32
    return %arg0, %c0_i32 : i32, i32
  }
}

module attributes {stable_mosaic.version = 11 : i64} {
  func.func @kernel(%arg0: i32, %arg1: memref<128x256xi8, #tpu.memory_space<vmem>>, %arg2: memref<128x1xf32, #tpu.memory_space<vmem>>, %arg3: memref<128x128xf32, #tpu.memory_space<vmem>>, %arg4: memref<256x128xf32, #tpu.memory_space<vmem>>, %arg5: memref<128x128xf32, #tpu.memory_space<vmem>>, %arg6: memref<128x128xf32, #tpu.memory_space<vmem>>, %arg7: memref<1x128xf32, #tpu.memory_space<vmem>>, %arg8: memref<128x128xf32, #tpu.memory_space<vmem>>) attributes {dimension_semantics = [#tpu.dimension_semantics<parallel>], iteration_bounds = array<i64: 2>, scalar_prefetch = 0 : i64, scratch_operands = 0 : i64, tpu.core_type = #tpu.core_type<tc>, window_params = [{transform_indices = @transform_0, window_bounds = array<i64: 128, 256>}, {transform_indices = @transform_1, window_bounds = array<i64: 128, 1>}, {transform_indices = @transform_2, window_bounds = array<i64: 128, 128>}, {pipeline_mode = #tpu.pipeline_mode<synchronous>, transform_indices = @transform_3, window_bounds = array<i64: 256, 128>}, {pipeline_mode = #tpu.pipeline_mode<synchronous>, transform_indices = @transform_4, window_bounds = array<i64: 128, 128>}, {pipeline_mode = #tpu.pipeline_mode<synchronous>, transform_indices = @transform_5, window_bounds = array<i64: 128, 128>}, {pipeline_mode = #tpu.pipeline_mode<synchronous>, transform_indices = @transform_6, window_bounds = array<i64: 1, 128>}, {transform_indices = @transform_7, window_bounds = array<i64: 128, 128>}]} {
    %c0 = arith.constant 0 : index
    %c0_0 = arith.constant 0 : index
    %0 = vector.load %arg1[%c0, %c0_0] : memref<128x256xi8, #tpu.memory_space<vmem>>, vector<128x256xi8>
    %1 = arith.sitofp %0 : vector<128x256xi8> to vector<128x256xf32>
    %c0_1 = arith.constant 0 : index
    %c0_2 = arith.constant 0 : index
    %2 = vector.load %arg4[%c0_1, %c0_2] : memref<256x128xf32, #tpu.memory_space<vmem>>, vector<256x128xf32>
    %cst = arith.constant dense<0.000000e+00> : vector<128x128xf32>
    %3 = tpu.matmul %1, %2, %cst {dimension_numbers = #tpu.dot_dimension_numbers<[1], [0], [0], [1], [0, 0, 1, 1], [], []>} : vector<128x256xf32>, vector<256x128xf32>, vector<128x128xf32> -> vector<128x128xf32>
    %c0_3 = arith.constant 0 : index
    %c0_4 = arith.constant 0 : index
    %4 = vector.load %arg2[%c0_3, %c0_4] : memref<128x1xf32, #tpu.memory_space<vmem>>, vector<128x1xf32>
    %5 = vector.broadcast %4 : vector<128x1xf32> to vector<128x128xf32>
    %6 = arith.mulf %3, %5 : vector<128x128xf32>
    %c0_5 = arith.constant 0 : index
    %c0_6 = arith.constant 0 : index
    %7 = vector.load %arg3[%c0_5, %c0_6] : memref<128x128xf32, #tpu.memory_space<vmem>>, vector<128x128xf32>
    %c0_7 = arith.constant 0 : index
    %c0_8 = arith.constant 0 : index
    %8 = vector.load %arg5[%c0_7, %c0_8] : memref<128x128xf32, #tpu.memory_space<vmem>>, vector<128x128xf32>
    %cst_9 = arith.constant dense<0.000000e+00> : vector<128x128xf32>
    %9 = tpu.matmul %7, %8, %cst_9 {dimension_numbers = #tpu.dot_dimension_numbers<[1], [0], [0], [1], [0, 0, 1, 1], [], []>} : vector<128x128xf32>, vector<128x128xf32>, vector<128x128xf32> -> vector<128x128xf32>
    %c0_10 = arith.constant 0 : index
    %c0_11 = arith.constant 0 : index
    %10 = vector.load %arg6[%c0_10, %c0_11] : memref<128x128xf32, #tpu.memory_space<vmem>>, vector<128x128xf32>
    %cst_12 = arith.constant dense<0.000000e+00> : vector<128x128xf32>
    %11 = tpu.matmul %6, %10, %cst_12 {dimension_numbers = #tpu.dot_dimension_numbers<[1], [0], [0], [1], [0, 0, 1, 1], [], []>} : vector<128x128xf32>, vector<128x128xf32>, vector<128x128xf32> -> vector<128x128xf32>
    %12 = arith.addf %9, %11 : vector<128x128xf32>
    %c0_13 = arith.constant 0 : index
    %c0_14 = arith.constant 0 : index
    %13 = vector.load %arg7[%c0_13, %c0_14] : memref<1x128xf32, #tpu.memory_space<vmem>>, vector<1x128xf32>
    %14 = vector.broadcast %13 : vector<1x128xf32> to vector<128x128xf32>
    %15 = arith.addf %12, %14 : vector<128x128xf32>
    %cst_15 = arith.constant 0.000000e+00 : f32
    %16 = vector.broadcast %cst_15 : f32 to vector<128x128xf32>
    %17 = arith.maximumf %15, %16 : vector<128x128xf32>
    %c0_16 = arith.constant 0 : index
    %c0_17 = arith.constant 0 : index
    %18 = vector.load %arg8[%c0_16, %c0_17] : memref<128x128xf32, #tpu.memory_space<vmem>>, vector<128x128xf32>
    tpu.vector_store %arg8[%c0_16, %c0_17], %17 {strides = array<i32>} : memref<128x128xf32, #tpu.memory_space<vmem>>, vector<128x128xf32>,
    return
  }
  func.func @transform_0(%arg0: i32) -> (i32, i32) {
    %c0_i32 = arith.constant 0 : i32
    %c0_i32_0 = arith.constant 0 : i32
    return %arg0, %c0_i32 : i32, i32
  }
  func.func @transform_1(%arg0: i32) -> (i32, i32) {
    %c0_i32 = arith.constant 0 : i32
    %c0_i32_0 = arith.constant 0 : i32
    return %arg0, %c0_i32 : i32, i32
  }
  func.func @transform_2(%arg0: i32) -> (i32, i32) {
    %c0_i32 = arith.constant 0 : i32
    %c0_i32_0 = arith.constant 0 : i32
    return %arg0, %c0_i32 : i32, i32
  }
  func.func @transform_3(%arg0: i32) -> (i32, i32) {
    %c0_i32 = arith.constant 0 : i32
    %c0_i32_0 = arith.constant 0 : i32
    %c0_i32_1 = arith.constant 0 : i32
    return %c0_i32, %c0_i32_0 : i32, i32
  }
  func.func @transform_4(%arg0: i32) -> (i32, i32) {
    %c0_i32 = arith.constant 0 : i32
    %c0_i32_0 = arith.constant 0 : i32
    %c0_i32_1 = arith.constant 0 : i32
    return %c0_i32, %c0_i32_0 : i32, i32
  }
  func.func @transform_5(%arg0: i32) -> (i32, i32) {
    %c0_i32 = arith.constant 0 : i32
    %c0_i32_0 = arith.constant 0 : i32
    %c0_i32_1 = arith.constant 0 : i32
    return %c0_i32, %c0_i32_0 : i32, i32
  }
  func.func @transform_6(%arg0: i32) -> (i32, i32) {
    %c0_i32 = arith.constant 0 : i32
    %c0_i32_0 = arith.constant 0 : i32
    %c0_i32_1 = arith.constant 0 : i32
    return %c0_i32, %c0_i32_0 : i32, i32
  }
  func.func @transform_7(%arg0: i32) -> (i32, i32) {
    %c0_i32 = arith.constant 0 : i32
    %c0_i32_0 = arith.constant 0 : i32
    return %arg0, %c0_i32 : i32, i32
  }
}

</mosaic_0001>

<bundles_post_ra>
// kernel: graphsage_forward.6
= control target key start
LH: loop header
LB: loop body
LE: loop exit
PB: predicated region body
PF: predicated region fallthrough
CT: control target
= control target key end

     0   :  { %s1048_s24 = smov 0   ;;  %s1353_s0 = inlined_call_operand.vmem [shape: s8[256,256], index: 0, kind: input, shape index: {}]   ;;  %s1354_s1 = inlined_call_operand.vmem [shape: f32[256,1], index: 1, kind: input, shape index: {}]   ;;  %s1355_s2 = inlined_call_operand.vmem [shape: f32[256,128], index: 2, kind: input, shape index: {}, may-alias: {2,3}]   ;;  %s1356_s3 = inlined_call_operand.vmem [shape: f32[256,128], index: 3, kind: input, shape index: {}, may-alias: {2,3}]   ;;  %s1357_s4 = inlined_call_operand.vmem [shape: f32[128,128], index: 4, kind: input, shape index: {}]   ;;  %s1358_s5 = inlined_call_operand.vmem [shape: f32[128,128], index: 5, kind: input, shape index: {}]   ;;  %s1359_s6 = inlined_call_operand.vmem [shape: f32[1,128], index: 6, kind: input, shape index: {}]   ;;  %s1360_s7 = inlined_call_operand.vmem [shape: f32[256,128], index: 7, kind: output, shape index: {}]  }
   0x1 LB: > { %s969_s25 = sadd.s32 4294967295, %s1005_s24   ;;  %p973_p0 = scmp.ge.s32.totalorder %s1005_s24, 1  ;;  %s1005_s24 = sphi %s1048_s24, %s17_s24  }
   0x2   : > { %p261_p1 = scmp.lt.s32.totalorder %s1005_s24, 3 }
   0x4   : > { %p262_p2 = pnand %p973_p0, %p261_p1 }
   0x5   : > { %s977_s9 = sshll.u32 (!%p262_p2), %s969_s25, 4  ;;  %s974_s20 = sshll.u32 (!%p262_p2), %s969_s25, 2 }
   0x6   : > { %265 = sbr.rel (%p262_p2) target bundleno = 431 (0x1af), region = 48  ;;  %p312_p3 = scmp.lt.s32.totalorder (!%p262_p2), %s977_s9, 31 }
   0x7   : > { %p305_p4 = scmp.lt.s32.totalorder (!%p262_p2), %s974_s20, 7 }
   0xb   : > { %v416_v0 = vld [vmem:[%s1356_s3 + $0x78] sm:$0xff]  ;;  %v415_v2 = vld [vmem:[%s1356_s3 + $0x70] sm:$0xff]  ;;  %v414_v4 = vld [vmem:[%s1356_s3 + $0x68] sm:$0xff]  ;;  %v1007_v6 = vmov 0   ;;  %s1362_s9 = smov (!%p312_p3, %s977_s9), 31  ;;  %s1364_s20 = smov (!%p305_p4, %s974_s20), 7 }
   0xc   : > { %v432_v1 = vld [vmem:[%s1356_s3 + $0xf8] sm:$0xff]  ;;  %433 = vmatpush.msra.mxu0 %v416_v0  ;;  %v431_v3 = vld [vmem:[%s1356_s3 + $0xf0] sm:$0xff]  ;;  %v430_v5 = vld [vmem:[%s1356_s3 + $0xe8] sm:$0xff]  ;;  %995 = vset.pattern.permute.xlu0 %v1007_v6  ;;  %s1080_s21 = sshll.u32 %s1362_s9, 3  ;;  %s985_s28 = sshll.u32 %s1364_s20, 4 }
   0xd   : > { %498 = vmatpush.msra.mxu1 %v432_v1  ;;  %996 = vset.pattern.permute.xlu1 %v1007_v6  ;;  %v413_v7 = vld [vmem:[%s1356_s3 + $0x60] sm:$0xff]  ;;  %s1086_s26 = scalar_lea.vmem %s1354_s1, %s1080_s21  ;;  %v412_v9 = vld [vmem:[%s1356_s3 + $0x58] sm:$0xff]  ;;  %v411_v12 = vld [vmem:[%s1356_s3 + $0x50] sm:$0xff]  ;;  %s1137_s14 = scalar_lea.vmem %s1353_s0, %s985_s28 }
   0xe   : > { %434 = vmatpush.msra.mxu0 %v415_v2  ;;  %v429_v8 = vld [vmem:[%s1356_s3 + $0xe0] sm:$0xff]  ;;  %997 = vset.pattern.permute.xlu2 %v1007_v6  ;;  %v428_v10 = vld [vmem:[%s1356_s3 + $0xd8] sm:$0xff]  ;;  %v427_v13 = vld [vmem:[%s1356_s3 + $0xd0] sm:$0xff]  ;;  %s1277_s20 = scalar_lea.vmem %s1355_s2, %s1080_s21  ;;  %s1316_s29 = scalar_lea.vmem %s1360_s7, %s1080_s21 }
   0xf   : > { %499 = vmatpush.msra.mxu1 %v431_v3  ;;  %v563_v11 = vld [vmem:[%s1086_s26] sm:$0xff]  ;;  %v410_v14 = vld [vmem:[%s1356_s3 + $0x48] sm:$0xff]  ;;  %v565_v16 = vld [vmem:[%s1086_s26 + $0x10] sm:$0xff] }
  0x10   : > { %435 = vmatpush.msra.mxu0 %v414_v4  ;;  %581 = vperm.xlu0 %995, %v563_v11   ;;  %v426_v15 = vld [vmem:[%s1356_s3 + $0xc8] sm:$0xff]  ;;  %v409_v17 = vld [vmem:[%s1356_s3 + $0x40] sm:$0xff]  ;;  %v408_v20 = vld [vmem:[%s1356_s3 + $0x38] sm:$0xff] }
  0x11   : > { %500 = vmatpush.msra.mxu1 %v430_v5  ;;  %v425_v18 = vld [vmem:[%s1356_s3 + $0xc0] sm:$0xff]  ;;  %591 = vperm.xlu1 %996, %v565_v16   ;;  %v564_v19 = vld [vmem:[%s1086_s26 + $0x8] sm:$0xff]  ;;  %v424_v21 = vld [vmem:[%s1356_s3 + $0xb8] sm:$0xff] }
  0x12   : > { %436 = vmatpush.msra.mxu0 %v413_v7  ;;  %v407_v22 = vld [vmem:[%s1356_s3 + $0x30] sm:$0xff]  ;;  %v566_v24 = vld [vmem:[%s1086_s26 + $0x18] sm:$0xff]  ;;  %v406_v25 = vld [vmem:[%s1356_s3 + $0x28] sm:$0xff] }
  0x13   : > { %501 = vmatpush.msra.mxu1 %v429_v8  ;;  %v423_v23 = vld [vmem:[%s1356_s3 + $0xb0] sm:$0xff]  ;;  %v422_v26 = vld [vmem:[%s1356_s3 + $0xa8] sm:$0xff]  ;;  %v405_v27 = vld [vmem:[%s1356_s3 + $0x20] sm:$0xff] }
  0x14   : > { %437 = vmatpush.msra.mxu0 %v412_v9  ;;  %v421_v28 = vld [vmem:[%s1356_s3 + $0xa0] sm:$0xff]  ;;  %v569_v29 = vld [vmem:[%s1086_s26 + $0x30] sm:$0xff]  ;;  %v404_v31 = vld [vmem:[%s1356_s3 + $0x18] sm:$0xff] }
  0x15   : > { %502 = vmatpush.msra.mxu1 %v428_v10  ;;  %v329_v30 = vld [vmem:[%s1137_s14] sm:$0xff]  ;;  %v420_v32 = vld [vmem:[%s1356_s3 + $0x98] sm:$0xff]  ;;  %v330_v33 = vld [vmem:[%s1137_s14 + $0x8] sm:$0xff] }
  0x16   : > { %438 = vmatpush.msra.mxu0 %v411_v12  ;;  %v403_v34 = vld [vmem:[%s1356_s3 + $0x10] sm:$0xff]  ;;  %v337_v36 = vunpack.c.0.s8 %v329_v30  ;;  %v338_v37 = vunpack.c.0.s8 %v330_v33  ;;  %v570_v38 = vld [vmem:[%s1086_s26 + $0x38] sm:$0xff]  ;;  %v402_v39 = vld [vmem:[%s1356_s3 + $0x8] sm:$0xff]  ;;  %v339_v46 = vunpack.c.1.s8 %v329_v30  ;;  %v340_v47 = vunpack.c.1.s8 %v330_v33 }
  0x17   : > { %503 = vmatpush.msra.mxu1 %v427_v13  ;;  %v419_v35 = vld [vmem:[%s1356_s3 + $0x90] sm:$0xff]  ;;  %v418_v40 = vld [vmem:[%s1356_s3 + $0x88] sm:$0xff]  ;;  %v401_v41 = vld [vmem:[%s1356_s3] sm:$0xff]  ;;  %v341_v53 = vunpack.c.2.s8 %v329_v30  ;;  %v342_v54 = vunpack.c.2.s8 %v330_v33  ;;  %v343_v60 = vunpack.c.3.s8 %v329_v30  ;;  %v344_v61 = vunpack.c.3.s8 %v330_v33 }
  0x18   : > { %439 = vmatpush.msra.mxu0 %v410_v14  ;;  %586 = vperm.xlu0 %995, %v564_v19   ;;  %v417_v42 = vld [vmem:[%s1356_s3 + $0x80] sm:$0xff]  ;;  %v369_v43 = vcvt.s32.f32 %v337_v36  ;;  %v572_v44 = vld [vmem:[%s1086_s26 + $0x48] sm:$0xff]  ;;  %v370_v45 = vcvt.s32.f32 %v338_v37  ;;  %v573_v48 = vld [vmem:[%s1086_s26 + $0x50] sm:$0xff]  ;;  %v371_v50 = vcvt.s32.f32 %v339_v46  ;;  %v372_v52 = vcvt.s32.f32 %v340_v47 }
  0x19   : > { %504 = vmatpush.msra.mxu1 %v426_v15  ;;  %596 = vperm.xlu1 %996, %v566_v24   ;;  %v567_v49 = vld [vmem:[%s1086_s26 + $0x20] sm:$0xff]  ;;  %v576_v55 = vld [vmem:[%s1086_s26 + $0x68] sm:$0xff]  ;;  %v373_v57 = vcvt.s32.f32 %v341_v53  ;;  %v578_v58 = vld [vmem:[%s1086_s26 + $0x78] sm:$0xff]  ;;  %v374_v59 = vcvt.s32.f32 %v342_v54  ;;  %v375_v63 = vcvt.s32.f32 %v343_v60  ;;  %v376_v0 = vcvt.s32.f32 %v344_v61 }
  0x1a   : > { %440 = vmatpush.msra.mxu0 %v409_v17  ;;  %601 = vperm.xlu2 %997, %v567_v49   ;;  %v575_v51 = vld [vmem:[%s1086_s26 + $0x60] sm:$0xff]  ;;  %v568_v56 = vld [vmem:[%s1086_s26 + $0x28] sm:$0xff]  ;;  %v331_v1 = vld [vmem:[%s1137_s14 + $0x10] sm:$0xff] }
  0x1b   : > { %505 = vmatpush.msra.mxu1 %v425_v18  ;;  %v571_v62 = vld [vmem:[%s1086_s26 + $0x40] sm:$0xff]  ;;  %v332_v2 = vld [vmem:[%s1137_s14 + $0x18] sm:$0xff]  ;;  %v345_v3 = vunpack.c.0.s8 %v331_v1  ;;  %v347_v8 = vunpack.c.1.s8 %v331_v1  ;;  %v577_v10 = vld [vmem:[%s1086_s26 + $0x70] sm:$0xff]  ;;  %v349_v13 = vunpack.c.2.s8 %v331_v1  ;;  %v351_v17 = vunpack.c.3.s8 %v331_v1 }
  0x1c   : > { %441 = vmatpush.msra.mxu0 %v408_v20  ;;  %v346_v4 = vunpack.c.0.s8 %v332_v2  ;;  %v574_v5 = vld [vmem:[%s1086_s26 + $0x58] sm:$0xff]  ;;  %v348_v9 = vunpack.c.1.s8 %v332_v2  ;;  %v350_v14 = vunpack.c.2.s8 %v332_v2  ;;  %v352_v18 = vunpack.c.3.s8 %v332_v2  ;;  %v716_v47 = vld [vmem:[%s1358_s5 + $0x48] sm:$0xff]  ;;  %v711_v1 = vld [vmem:[%s1358_s5 + $0x20] sm:$0xff] }
  0x1d   : > { %506 = vmatpush.msra.mxu1 %v424_v21  ;;  %v377_v6 = vcvt.s32.f32 %v345_v3  ;;  %v379_v11 = vcvt.s32.f32 %v347_v8  ;;  %v381_v15 = vcvt.s32.f32 %v349_v13  ;;  %v383_v19 = vcvt.s32.f32 %v351_v17  ;;  %v333_v21 = vld [vmem:[%s1137_s14 + $0x20] sm:$0xff]  ;;  %v706_v30 = vld [vmem:[%s1357_s4 + $0x78] sm:$0xff]  ;;  %v712_v60 = vld [vmem:[%s1358_s5 + $0x28] sm:$0xff] }
  0x1e   : > { %442 = vmatpush.msra.mxu0 %v407_v22  ;;  %v378_v7 = vcvt.s32.f32 %v346_v4  ;;  %v380_v12 = vcvt.s32.f32 %v348_v9  ;;  %v382_v16 = vcvt.s32.f32 %v350_v14  ;;  %v384_v20 = vcvt.s32.f32 %v352_v18  ;;  %v334_v22 = vld [vmem:[%s1137_s14 + $0x28] sm:$0xff]  ;;  %788 = vmatpush.msra.mxu3 %v706_v30  ;;  %v714_v53 = vld [vmem:[%s1358_s5 + $0x38] sm:$0xff]  ;;  %v695_v2 = vld [vmem:[%s1357_s4 + $0x20] sm:$0xff] }
  0x1f   : > { %507 = vmatpush.msra.mxu1 %v423_v23  ;;  %v353_v23 = vunpack.c.0.s8 %v333_v21  ;;  %v354_v24 = vunpack.c.0.s8 %v334_v22  ;;  %v357_v37 = vunpack.c.2.s8 %v333_v21  ;;  %v359_v49 = vunpack.c.3.s8 %v333_v21  ;;  %v698_v54 = vld [vmem:[%s1357_s4 + $0x38] sm:$0xff]  ;;  %v693_v8 = vld [vmem:[%s1357_s4 + $0x10] sm:$0xff]  ;;  %v708_v9 = vld [vmem:[%s1358_s5 + $0x8] sm:$0xff] }
  0x20   : > { %443 = vmatpush.msra.mxu0 %v406_v25  ;;  %611 = vperm.xlu0 %995, %v569_v29   ;;  %v722_v29 = vld [vmem:[%s1358_s5 + $0x78] sm:$0xff]  ;;  %v691_v13 = vld [vmem:[%s1357_s4] sm:$0xff] }
  0x21   : > { %508 = vmatpush.msra.mxu1 %v422_v26  ;;  %616 = vperm.xlu1 %996, %v570_v38   ;;  %v385_v25 = vcvt.s32.f32 %v353_v23  ;;  %v386_v26 = vcvt.s32.f32 %v354_v24  ;;  %v358_v38 = vunpack.c.2.s8 %v334_v22  ;;  %v336_v61 = vld [vmem:[%s1137_s14 + $0x38] sm:$0xff] }
  0x22   : > { %444 = vmatpush.msra.mxu0 %v405_v27  ;;  %606 = vperm.xlu2 %997, %v568_v56   ;;  %v355_v27 = vunpack.c.1.s8 %v333_v21  ;;  %v391_v56 = vcvt.s32.f32 %v359_v49  ;;  %v710_v3 = vld [vmem:[%s1358_s5 + $0x18] sm:$0xff]  ;;  %v364_v14 = vunpack.c.1.s8 %v336_v61  ;;  %v368_v24 = vunpack.c.3.s8 %v336_v61 }
  0x23   : > { %509 = vmatpush.msra.mxu1 %v421_v28  ;;  %v356_v28 = vunpack.c.1.s8 %v334_v22  ;;  %723 = vmatpush.msra.mxu2 %v722_v29  ;;  %v390_v46 = vcvt.s32.f32 %v358_v38  ;;  %v694_v4 = vld [vmem:[%s1357_s4 + $0x18] sm:$0xff] }
  0x24   : > { %445 = vmatpush.msra.mxu0 %v404_v31  ;;  %v721_v31 = vld [vmem:[%s1358_s5 + $0x70] sm:$0xff]  ;;  %v387_v33 = vcvt.s32.f32 %v355_v27  ;;  %v396_v17 = vcvt.s32.f32 %v364_v14  ;;  %v400_v27 = vcvt.s32.f32 %v368_v24  ;;  %v688_v24 = vld [vmem:[%s1277_s20 + $0x68] sm:$0xff] }
  0x25   : > { %510 = vmatpush.msra.mxu1 %v420_v32  ;;  %v705_v32 = vld [vmem:[%s1357_s4 + $0x70] sm:$0xff]  ;;  %v388_v36 = vcvt.s32.f32 %v356_v28  ;;  %724 = vmatpush.msra.mxu2 %v721_v31  ;;  %v678_v28 = vld [vmem:[%s1277_s20 + $0x18] sm:$0xff] }
  0x26   : > { %446 = vmatpush.msra.mxu0 %v403_v34  ;;  %v720_v34 = vld [vmem:[%s1358_s5 + $0x68] sm:$0xff]  ;;  %789 = vmatpush.msra.mxu3 %v705_v32 }
  0x27   : > { %511 = vmatpush.msra.mxu1 %v419_v35  ;;  %v704_v35 = vld [vmem:[%s1357_s4 + $0x68] sm:$0xff]  ;;  %725 = vmatpush.msra.mxu2 %v720_v34  ;;  %v679_v34 = vld [vmem:[%s1277_s20 + $0x20] sm:$0xff] }
  0x28   : > { %447 = vmatpush.msra.mxu0 %v402_v39  ;;  %626 = vperm.xlu0 %995, %v572_v44   ;;  %v719_v39 = vld [vmem:[%s1358_s5 + $0x60] sm:$0xff]  ;;  %v701_v44 = vld [vmem:[%s1357_s4 + $0x50] sm:$0xff] }
  0x29   : > { %512 = vmatpush.msra.mxu1 %v418_v40  ;;  %631 = vperm.xlu1 %996, %v573_v48   ;;  %v703_v40 = vld [vmem:[%s1357_s4 + $0x60] sm:$0xff]  ;;  %v700_v48 = vld [vmem:[%s1357_s4 + $0x48] sm:$0xff] }
  0x2a   : > { %448 = vmatpush.msra.mxu0 %v401_v41  ;;  %621 = vperm.xlu2 %997, %v571_v62   ;;  %v718_v41 = vld [vmem:[%s1358_s5 + $0x58] sm:$0xff]  ;;  %v696_v62 = vld [vmem:[%s1357_s4 + $0x28] sm:$0xff] }
  0x2b   : > { %513 = vmatpush.msra.mxu1 %v417_v42  ;;  %449 = vmatmul.f32.vlgmr.msra.gmra.mxu0 %v369_v43  ;;  %v702_v42 = vld [vmem:[%s1357_s4 + $0x58] sm:$0xff]  ;;  %v717_v43 = vld [vmem:[%s1358_s5 + $0x50] sm:$0xff] }
  0x2c   : > { %514 = vmatmul.f32.vlgmr.msra.gmra.mxu1 %v370_v45  ;;  %790 = vmatpush.msra.mxu3 %v704_v35  ;;  %v389_v45 = vcvt.s32.f32 %v357_v37 }
  0x2d   : > { %726 = vmatpush.msra.mxu2 %v719_v39 }
  0x2e   : > { %791 = vmatpush.msra.mxu3 %v703_v40  ;;  %v680_v40 = vld [vmem:[%s1277_s20 + $0x28] sm:$0xff] }
  0x2f   : > { %727 = vmatpush.msra.mxu2 %v718_v41 }
  0x30   : > { %641 = vperm.xlu0 %995, %v575_v51   ;;  %792 = vmatpush.msra.mxu3 %v702_v42  ;;  %v715_v51 = vld [vmem:[%s1358_s5 + $0x40] sm:$0xff] }
  0x31   : > { %646 = vperm.xlu1 %996, %v576_v55   ;;  %728 = vmatpush.msra.mxu2 %v717_v43  ;;  %v713_v55 = vld [vmem:[%s1358_s5 + $0x30] sm:$0xff] }
  0x32   : > { %636 = vperm.xlu2 %997, %v574_v5   ;;  %793 = vmatpush.msra.mxu3 %v701_v44 }
  0x33   : > { %452 = vmatmul.f32.gmra.mxu0 %v371_v50  ;;  %729 = vmatpush.msra.mxu2 %v716_v47  ;;  %v360_v50 = vunpack.c.3.s8 %v334_v22 }
  0x34   : > { %517 = vmatmul.f32.gmra.mxu1 %v372_v52  ;;  %794 = vmatpush.msra.mxu3 %v700_v48  ;;  %v699_v52 = vld [vmem:[%s1357_s4 + $0x40] sm:$0xff] }
  0x35   : > { %730 = vmatpush.msra.mxu2 %v715_v51 }
  0x36   : > { %795 = vmatpush.msra.mxu3 %v699_v52  ;;  %v682_v52 = vld [vmem:[%s1277_s20 + $0x38] sm:$0xff] }
  0x37   : > { %731 = vmatpush.msra.mxu2 %v714_v53 }
  0x38   : > { %656 = vperm.xlu0 %995, %v578_v58   ;;  %v392_v58 = vcvt.s32.f32 %v360_v50  ;;  %796 = vmatpush.msra.mxu3 %v698_v54 }
  0x39   : > { %732 = vmatpush.msra.mxu2 %v713_v55 }
  0x3a   : > { %651 = vperm.xlu2 %997, %v577_v10   ;;  %v692_v10 = vld [vmem:[%s1357_s4 + $0x8] sm:$0xff] }
  0x3b   : > { %455 = vmatmul.f32.gmra.mxu0 %v373_v57  ;;  %v697_v57 = vld [vmem:[%s1357_s4 + $0x30] sm:$0xff]  ;;  %733 = vmatpush.msra.mxu2 %v712_v60 }
  0x3c   : > { %520 = vmatmul.f32.gmra.mxu1 %v374_v59  ;;  %v335_v59 = vld [vmem:[%s1137_s14 + $0x30] sm:$0xff]  ;;  %797 = vmatpush.msra.mxu3 %v697_v57 }
  0x3d   : > { %734 = vmatpush.msra.mxu2 %v711_v1  ;;  %v365_v18 = vunpack.c.2.s8 %v335_v59  ;;  %v367_v23 = vunpack.c.3.s8 %v335_v59 }
  0x3e   : > { %798 = vmatpush.msra.mxu3 %v696_v62 }
  0x3f   : > { %735 = vmatpush.msra.mxu2 %v710_v3  ;;  %v397_v21 = vcvt.s32.f32 %v365_v18  ;;  %v687_v18 = vld [vmem:[%s1277_s20 + $0x60] sm:$0xff] }
  0x40   : > { %799 = vmatpush.msra.mxu3 %v695_v2 }
  0x42   : > { %800 = vmatpush.msra.mxu3 %v694_v4 }
  0x43   : > { %458 = vmatmul.f32.gmra.mxu0 %v375_v63  ;;  %v361_v63 = vunpack.c.0.s8 %v335_v59 }
  0x44   : > { %523 = vmatmul.f32.gmra.mxu1 %v376_v0  ;;  %v362_v0 = vunpack.c.0.s8 %v336_v61  ;;  %801 = vmatpush.msra.mxu3 %v693_v8 }
  0x45   : > { %v393_v5 = vcvt.s32.f32 %v361_v63 }
  0x46   : > { %802 = vmatpush.msra.mxu3 %v692_v10 }
  0x48   : > { %803 = vmatpush.msra.mxu3 %v691_v13 }
  0x4b   : > { %461 = vmatmul.f32.gmra.mxu0 %v377_v6  ;;  %v394_v6 = vcvt.s32.f32 %v362_v0  ;;  %v684_v0 = vld [vmem:[%s1277_s20 + $0x48] sm:$0xff] }
  0x4c   : > { %526 = vmatmul.f32.gmra.mxu1 %v378_v7  ;;  %v709_v7 = vld [vmem:[%s1358_s5 + $0x10] sm:$0xff] }
  0x4d   : > { %736 = vmatpush.msra.mxu2 %v709_v7 }
  0x4f   : > { %737 = vmatpush.msra.mxu2 %v708_v9 }
  0x53   : > { %464 = vmatmul.f32.gmra.mxu0 %v379_v11  ;;  %v707_v11 = vld [vmem:[%s1358_s5] sm:$0xff] }
  0x54   : > { %529 = vmatmul.f32.gmra.mxu1 %v380_v12  ;;  %v363_v12 = vunpack.c.1.s8 %v335_v59  ;;  %738 = vmatpush.msra.mxu2 %v707_v11 }
  0x5b   : > { %467 = vmatmul.f32.gmra.mxu0 %v381_v15  ;;  %v675_v15 = vld [vmem:[%s1277_s20] sm:$0xff] }
  0x5c   : > { %532 = vmatmul.f32.gmra.mxu1 %v382_v16  ;;  %v395_v16 = vcvt.s32.f32 %v363_v12  ;;  %804 = vmatmul.f32.vlgmr.msra.gmra.mxu3 %v675_v15  ;;  %v686_v12 = vld [vmem:[%s1277_s20 + $0x58] sm:$0xff] }
  0x63   : > { %470 = vmatmul.f32.gmra.mxu0 %v383_v19  ;;  %v366_v19 = vunpack.c.2.s8 %v336_v61 }
  0x64   : > { %535 = vmatmul.f32.gmra.mxu1 %v384_v20  ;;  %v676_v20 = vld [vmem:[%s1277_s20 + $0x8] sm:$0xff] }
  0x65   : > { %807 = vmatmul.f32.gmra.mxu3 %v676_v20  ;;  %v398_v22 = vcvt.s32.f32 %v366_v19 }
  0x6b   : > { %473 = vmatmul.f32.gmra.mxu0 %v385_v25  ;;  %v677_v25 = vld [vmem:[%s1277_s20 + $0x10] sm:$0xff] }
  0x6c   : > { %538 = vmatmul.f32.gmra.mxu1 %v386_v26  ;;  %v399_v26 = vcvt.s32.f32 %v367_v23 }
  0x6d   : > { %810 = vmatmul.f32.gmra.mxu3 %v677_v25 }
  0x73   : > { %476 = vmatmul.f32.gmra.mxu0 %v387_v33 }
  0x74   : > { %541 = vmatmul.f32.gmra.mxu1 %v388_v36  ;;  %v602_v54 = vpop.permute.xlu2 %601 }
  0x75   : > { %813 = vmatmul.f32.gmra.mxu3 %v678_v28 }
  0x7b   : > { %479 = vmatmul.f32.gmra.mxu0 %v389_v45 }
  0x7c   : > { %544 = vmatmul.f32.gmra.mxu1 %v390_v46  ;;  %v681_v46 = vld [vmem:[%s1277_s20 + $0x30] sm:$0xff]  ;;  %v607_v62 = vpop.permute.xlu2 %606 }
  0x7d   : > { %816 = vmatmul.f32.gmra.mxu3 %v679_v34 }
  0x82   : > { %v582_v30 = vpop.permute.xlu0 %581 }
  0x83   : > { %482 = vmatmul.f32.gmra.mxu0 %v391_v56  ;;  %v592_v42 = vpop.permute.xlu1 %591 }
  0x84   : > { %547 = vmatmul.f32.gmra.mxu1 %v392_v58  ;;  %v683_v58 = vld [vmem:[%s1277_s20 + $0x40] sm:$0xff] }
  0x85   : > { %819 = vmatmul.f32.gmra.mxu3 %v680_v40 }
  0x8a   : > { %v587_v38 = vpop.permute.xlu0 %586 }
  0x8b   : > { %485 = vmatmul.f32.gmra.mxu0 %v393_v5  ;;  %v597_v50 = vpop.permute.xlu1 %596 }
  0x8c   : > { %550 = vmatmul.f32.gmra.mxu1 %v394_v6  ;;  %v685_v6 = vld [vmem:[%s1277_s20 + $0x50] sm:$0xff] }
  0x8d   : > { %822 = vmatmul.f32.gmra.mxu3 %v681_v46 }
  0x92   : > { %v612_v4 = vpop.permute.xlu0 %611 }
  0x93   : > { %488 = vmatmul.f32.gmra.mxu0 %v395_v16  ;;  %v617_v10 = vpop.permute.xlu1 %616  ;;  %v622_v16 = vpop.permute.xlu2 %621 }
  0x94   : > { %553 = vmatmul.f32.gmra.mxu1 %v396_v17 }
  0x95   : > { %825 = vmatmul.f32.gmra.mxu3 %v682_v52 }
  0x9b   : > { %491 = vmatmul.f32.gmra.mxu0 %v397_v21  ;;  %v632_v28 = vpop.permute.xlu1 %631  ;;  %v637_v34 = vpop.permute.xlu2 %636 }
  0x9c   : > { %556 = vmatmul.f32.gmra.mxu1 %v398_v22  ;;  %v627_v22 = vpop.permute.xlu0 %626 }
  0x9d   : > { %828 = vmatmul.f32.gmra.mxu3 %v683_v58 }
  0xa3   : > { %494 = vmatmul.f32.gmra.mxu0 %v399_v26  ;;  %v647_v46 = vpop.permute.xlu1 %646 }
  0xa4   : > { %559 = vmatmul.f32.gmra.mxu1 %v400_v27  ;;  %v642_v40 = vpop.permute.xlu0 %641 }
  0xa5   : > { %831 = vmatmul.f32.gmra.mxu3 %v684_v0 }
  0xa8   : > { %v450_v29 = vpop.f32.mrf.mxu0 }
  0xa9   : > { %v515_v31 = vpop.f32.mrf.mxu1 }
  0xaa   : > { %v516_v32 = vadd.f32 %v515_v31, %v450_v29 }
  0xac   : > { %v659_v33 = vmul.f32 %v582_v30, %v516_v32  ;;  %v689_v30 = vld [vmem:[%s1277_s20 + $0x70] sm:$0xff] }
  0xad   : > { %834 = vmatmul.f32.gmra.mxu3 %v685_v6 }
  0xae   : > { %739 = vmatmul.f32.vlgmr.msra.gmra.mxu2 %v659_v33 }
  0xb0   : > { %v453_v35 = vpop.f32.mrf.mxu0 }
  0xb1   : > { %v518_v36 = vpop.f32.mrf.mxu1 }
  0xb2   : > { %v519_v37 = vadd.f32 %v518_v36, %v453_v35  ;;  %v690_v36 = vld [vmem:[%s1277_s20 + $0x78] sm:$0xff] }
  0xb4   : > { %v660_v39 = vmul.f32 %v587_v38, %v519_v37 }
  0xb5   : > { %837 = vmatmul.f32.gmra.mxu3 %v686_v12 }
  0xb6   : > { %742 = vmatmul.f32.gmra.mxu2 %v660_v39 }
  0xb8   : > { %v456_v41 = vpop.f32.mrf.mxu0 }
  0xb9   : > { %v521_v43 = vpop.f32.mrf.mxu1 }
  0xba   : > { %v522_v44 = vadd.f32 %v521_v43, %v456_v41 }
  0xbc   : > { %v661_v45 = vmul.f32 %v592_v42, %v522_v44 }
  0xbd   : > { %840 = vmatmul.f32.gmra.mxu3 %v687_v18 }
  0xbe   : > { %745 = vmatmul.f32.gmra.mxu2 %v661_v45 }
  0xc0   : > { %v459_v47 = vpop.f32.mrf.mxu0 }
  0xc1   : > { %v524_v48 = vpop.f32.mrf.mxu1 }
  0xc2   : > { %v525_v49 = vadd.f32 %v524_v48, %v459_v47 }
  0xc4   : > { %v662_v51 = vmul.f32 %v597_v50, %v525_v49 }
  0xc5   : > { %843 = vmatmul.f32.gmra.mxu3 %v688_v24 }
  0xc6   : > { %748 = vmatmul.f32.gmra.mxu2 %v662_v51  ;;  %v652_v51 = vpop.permute.xlu2 %651 }
  0xc8   : > { %v462_v53 = vpop.f32.mrf.mxu0 }
  0xc9   : > { %v527_v55 = vpop.f32.mrf.mxu1 }
  0xca   : > { %v528_v56 = vadd.f32 %v527_v55, %v462_v53 }
  0xcc   : > { %v663_v57 = vmul.f32 %v602_v54, %v528_v56 }
  0xcd   : > { %846 = vmatmul.f32.gmra.mxu3 %v689_v30 }
  0xce   : > { %751 = vmatmul.f32.gmra.mxu2 %v663_v57  ;;  %v657_v57 = vpop.permute.xlu0 %656 }
  0xd0   : > { %v465_v59 = vpop.f32.mrf.mxu0 }
  0xd1   : > { %v530_v60 = vpop.f32.mrf.mxu1 }
  0xd2   : > { %v531_v61 = vadd.f32 %v530_v60, %v465_v59 }
  0xd4   : > { %v664_v63 = vmul.f32 %v607_v62, %v531_v61  ;;  %v1310_v61 = vld [vmem:[%s1359_s6] ss:$0 sm:$0xff] }
  0xd5   : > { %849 = vmatmul.f32.gmra.mxu3 %v690_v36 }
  0xd6   : > { %754 = vmatmul.f32.gmra.mxu2 %v664_v63 }
  0xd8   : > { %v468_v1 = vpop.f32.mrf.mxu0 }
  0xd9   : > { %v533_v2 = vpop.f32.mrf.mxu1 }
  0xda   : > { %v534_v3 = vadd.f32 %v533_v2, %v468_v1 }
  0xdc   : > { %v665_v5 = vmul.f32 %v612_v4, %v534_v3 }
  0xde   : > { %757 = vmatmul.f32.gmra.mxu2 %v665_v5 }
  0xdf   : > { %v805_v45 = vpop.f32.mrf.mxu3 }
  0xe0   : > { %v471_v7 = vpop.f32.mrf.mxu0 }
  0xe1   : > { %v536_v8 = vpop.f32.mrf.mxu1 }
  0xe2   : > { %v537_v9 = vadd.f32 %v536_v8, %v471_v7 }
  0xe4   : > { %v666_v11 = vmul.f32 %v617_v10, %v537_v9 }
  0xe6   : > { %760 = vmatmul.f32.gmra.mxu2 %v666_v11 }
  0xe8   : > { %v474_v13 = vpop.f32.mrf.mxu0  ;;  %v808_v52 = vpop.f32.mrf.mxu3 }
  0xe9   : > { %v539_v14 = vpop.f32.mrf.mxu1 }
  0xea   : > { %v540_v15 = vadd.f32 %v539_v14, %v474_v13 }
  0xec   : > { %v667_v17 = vmul.f32 %v622_v16, %v540_v15 }
  0xee   : > { %763 = vmatmul.f32.gmra.mxu2 %v667_v17 }
  0xf0   : > { %v477_v19 = vpop.f32.mrf.mxu0  ;;  %v811_v59 = vpop.f32.mrf.mxu3 }
  0xf1   : > { %v542_v20 = vpop.f32.mrf.mxu1 }
  0xf2   : > { %v543_v21 = vadd.f32 %v542_v20, %v477_v19 }
  0xf4   : > { %v668_v23 = vmul.f32 %v627_v22, %v543_v21 }
  0xf6   : > { %766 = vmatmul.f32.gmra.mxu2 %v668_v23 }
  0xf8   : > { %v480_v25 = vpop.f32.mrf.mxu0  ;;  %v814_v60 = vpop.f32.mrf.mxu3 }
  0xf9   : > { %v545_v26 = vpop.f32.mrf.mxu1 }
  0xfa   : > { %v546_v27 = vadd.f32 %v545_v26, %v480_v25 }
  0xfc   : > { %v669_v29 = vmul.f32 %v632_v28, %v546_v27 }
  0xfe   : > { %769 = vmatmul.f32.gmra.mxu2 %v669_v29 }
 0x100   : > { %v483_v31 = vpop.f32.mrf.mxu0  ;;  %v817_v2 = vpop.f32.mrf.mxu3 }
 0x101   : > { %v548_v32 = vpop.f32.mrf.mxu1 }
 0x102   : > { %v549_v33 = vadd.f32 %v548_v32, %v483_v31 }
 0x104   : > { %v670_v35 = vmul.f32 %v637_v34, %v549_v33 }
 0x106   : > { %772 = vmatmul.f32.gmra.mxu2 %v670_v35 }
 0x108   : > { %v486_v37 = vpop.f32.mrf.mxu0  ;;  %v820_v7 = vpop.f32.mrf.mxu3 }
 0x109   : > { %v551_v38 = vpop.f32.mrf.mxu1 }
 0x10a   : > { %v552_v39 = vadd.f32 %v551_v38, %v486_v37 }
 0x10c   : > { %v671_v41 = vmul.f32 %v642_v40, %v552_v39 }
 0x10e   : > { %775 = vmatmul.f32.gmra.mxu2 %v671_v41 }
 0x110   : > { %v489_v42 = vpop.f32.mrf.mxu0  ;;  %v823_v12 = vpop.f32.mrf.mxu3 }
 0x111   : > { %v554_v43 = vpop.f32.mrf.mxu1 }
 0x112   : > { %v555_v44 = vadd.f32 %v554_v43, %v489_v42 }
 0x114   : > { %v672_v47 = vmul.f32 %v647_v46, %v555_v44 }
 0x116   : > { %778 = vmatmul.f32.gmra.mxu2 %v672_v47 }
 0x118   : > { %v492_v48 = vpop.f32.mrf.mxu0  ;;  %v826_v16 = vpop.f32.mrf.mxu3 }
 0x119   : > { %v557_v49 = vpop.f32.mrf.mxu1 }
 0x11a   : > { %v558_v50 = vadd.f32 %v557_v49, %v492_v48 }
 0x11c   : > { %v673_v53 = vmul.f32 %v652_v51, %v558_v50 }
 0x11e   : > { %781 = vmatmul.f32.gmra.mxu2 %v673_v53 }
 0x120   : > { %v495_v54 = vpop.f32.mrf.mxu0  ;;  %v829_v21 = vpop.f32.mrf.mxu3 }
 0x121   : > { %v560_v55 = vpop.f32.mrf.mxu1 }
 0x122   : > { %v561_v56 = vadd.f32 %v560_v55, %v495_v54 }
 0x124   : > { %v674_v58 = vmul.f32 %v657_v57, %v561_v56 }
 0x126   : > { %784 = vmatmul.f32.gmra.mxu2 %v674_v58 }
 0x128   : > { %v832_v26 = vpop.f32.mrf.mxu3 }
 0x130   : > { %v835_v31 = vpop.f32.mrf.mxu3 }
 0x131   : > { %v740_v62 = vpop.f32.mrf.mxu2 }
 0x132   : > { %v806_v63 = vadd.f32 %v805_v45, %v740_v62 }
 0x134   : > { %v857_v0 = vadd.f32 %v1310_v61, %v806_v63 }
 0x136   : > { %873 = vst [vmem:[%s1316_s29] sm:$0xff] %v857_v0 }
 0x138   : > { %v838_v35 = vpop.f32.mrf.mxu3 }
 0x139   : > { %v743_v1 = vpop.f32.mrf.mxu2 }
 0x13a   : > { %v809_v3 = vadd.f32 %v808_v52, %v743_v1 }
 0x13c   : > { %v858_v4 = vadd.f32 %v1310_v61, %v809_v3 }
 0x13e   : > { %874 = vst [vmem:[%s1316_s29 + $0x8] sm:$0xff] %v858_v4 }
 0x140   : > { %v841_v40 = vpop.f32.mrf.mxu3 }
 0x141   : > { %v746_v5 = vpop.f32.mrf.mxu2 }
 0x142   : > { %v812_v6 = vadd.f32 %v811_v59, %v746_v5 }
 0x144   : > { %v859_v8 = vadd.f32 %v1310_v61, %v812_v6 }
 0x146   : > { %875 = vst [vmem:[%s1316_s29 + $0x10] sm:$0xff] %v859_v8 }
 0x148   : > { %v844_v45 = vpop.f32.mrf.mxu3 }
 0x149   : > { %v749_v9 = vpop.f32.mrf.mxu2 }
 0x14a   : > { %v815_v10 = vadd.f32 %v814_v60, %v749_v9 }
 0x14c   : > { %v860_v11 = vadd.f32 %v1310_v61, %v815_v10 }
 0x14e   : > { %876 = vst [vmem:[%s1316_s29 + $0x18] sm:$0xff] %v860_v11 }
 0x150   : > { %v847_v50 = vpop.f32.mrf.mxu3 }
 0x151   : > { %v752_v13 = vpop.f32.mrf.mxu2 }
 0x152   : > { %v818_v14 = vadd.f32 %v817_v2, %v752_v13 }
 0x154   : > { %v861_v15 = vadd.f32 %v1310_v61, %v818_v14 }
 0x156   : > { %877 = vst [vmem:[%s1316_s29 + $0x20] sm:$0xff] %v861_v15 }
 0x158   : > { %v850_v54 = vpop.f32.mrf.mxu3 }
 0x159   : > { %v755_v17 = vpop.f32.mrf.mxu2 }
 0x15a   : > { %v821_v18 = vadd.f32 %v820_v7, %v755_v17 }
 0x15c   : > { %v862_v19 = vadd.f32 %v1310_v61, %v821_v18 }
 0x15e   : > { %878 = vst [vmem:[%s1316_s29 + $0x28] sm:$0xff] %v862_v19 }
 0x161   : > { %v758_v20 = vpop.f32.mrf.mxu2 }
 0x162   : > { %v824_v22 = vadd.f32 %v823_v12, %v758_v20 }
 0x164   : > { %v863_v23 = vadd.f32 %v1310_v61, %v824_v22 }
 0x166   : > { %879 = vst [vmem:[%s1316_s29 + $0x30] sm:$0xff] %v863_v23 }
 0x169   : > { %v761_v24 = vpop.f32.mrf.mxu2 }
 0x16a   : > { %v827_v25 = vadd.f32 %v826_v16, %v761_v24 }
 0x16c   : > { %v864_v27 = vadd.f32 %v1310_v61, %v827_v25 }
 0x16e   : > { %880 = vst [vmem:[%s1316_s29 + $0x38] sm:$0xff] %v864_v27 }
 0x171   : > { %v764_v28 = vpop.f32.mrf.mxu2 }
 0x172   : > { %v830_v29 = vadd.f32 %v829_v21, %v764_v28 }
 0x174   : > { %v865_v30 = vadd.f32 %v1310_v61, %v830_v29 }
 0x176   : > { %881 = vst [vmem:[%s1316_s29 + $0x40] sm:$0xff] %v865_v30 }
 0x179   : > { %v767_v32 = vpop.f32.mrf.mxu2 }
 0x17a   : > { %v833_v33 = vadd.f32 %v832_v26, %v767_v32 }
 0x17c   : > { %v866_v34 = vadd.f32 %v1310_v61, %v833_v33 }
 0x17e   : > { %882 = vst [vmem:[%s1316_s29 + $0x48] sm:$0xff] %v866_v34 }
 0x181   : > { %v770_v36 = vpop.f32.mrf.mxu2 }
 0x182   : > { %v836_v37 = vadd.f32 %v835_v31, %v770_v36 }
 0x184   : > { %v867_v38 = vadd.f32 %v1310_v61, %v836_v37 }
 0x186   : > { %883 = vst [vmem:[%s1316_s29 + $0x50] sm:$0xff] %v867_v38 }
 0x189   : > { %v773_v39 = vpop.f32.mrf.mxu2 }
 0x18a   : > { %v839_v41 = vadd.f32 %v838_v35, %v773_v39 }
 0x18c   : > { %v868_v42 = vadd.f32 %v1310_v61, %v839_v41 }
 0x18e   : > { %884 = vst [vmem:[%s1316_s29 + $0x58] sm:$0xff] %v868_v42 }
 0x191   : > { %v776_v43 = vpop.f32.mrf.mxu2 }
 0x192   : > { %v842_v44 = vadd.f32 %v841_v40, %v776_v43 }
 0x194   : > { %v869_v46 = vadd.f32 %v1310_v61, %v842_v44 }
 0x196   : > { %885 = vst [vmem:[%s1316_s29 + $0x60] sm:$0xff] %v869_v46 }
 0x199   : > { %v779_v47 = vpop.f32.mrf.mxu2 }
 0x19a   : > { %v845_v48 = vadd.f32 %v844_v45, %v779_v47 }
 0x19c   : > { %v870_v49 = vadd.f32 %v1310_v61, %v845_v48 }
 0x19e   : > { %886 = vst [vmem:[%s1316_s29 + $0x68] sm:$0xff] %v870_v49 }
 0x1a1   : > { %v782_v51 = vpop.f32.mrf.mxu2 }
 0x1a2   : > { %v848_v52 = vadd.f32 %v847_v50, %v782_v51 }
 0x1a4   : > { %v871_v53 = vadd.f32 %v1310_v61, %v848_v52 }
 0x1a6   : > { %887 = vst [vmem:[%s1316_s29 + $0x70] sm:$0xff] %v871_v53 }
 0x1a9   : > { %v785_v55 = vpop.f32.mrf.mxu2 }
 0x1aa   : > { %v851_v56 = vadd.f32 %v850_v54, %v785_v55 }
 0x1ac   : > { %v872_v57 = vadd.f32 %v1310_v61, %v851_v56 }
 0x1ae   : > { %888 = vst [vmem:[%s1316_s29 + $0x78] sm:$0xff] %v872_v57 }
 0x1af PF: > { %s17_s24 = sadd.s32 1, %s1005_s24  }
 0x1b0   : > { %p14_p5 = scmp.ge.s32.totalorder %s17_s24, 4  }
 0x1b2   :  { %16 = sbr.rel (!%p14_p5) target bundleno = 1 (0x1), region = 84 }

// kernel: graphsage_forward.7
= control target key start
LH: loop header
LB: loop body
LE: loop exit
PB: predicated region body
PF: predicated region fallthrough
CT: control target
= control target key end

     0   :  { %v516_v2 = vmov 0   ;;  %s824_s0 = inlined_call_operand.vmem [shape: f32[128,128], index: 0, kind: input, shape index: {}]   ;;  %s825_s2 = inlined_call_operand.vmem [shape: f32[128,1], index: 2, kind: input, shape index: {}]   ;;  %s826_s1 = inlined_call_operand.vmem [shape: f32[128,128], index: 1, kind: input, shape index: {}]   ;;  %s827_s4 = inlined_call_operand.vmem [shape: f32[128,1], index: 4, kind: input, shape index: {}]   ;;  %s828_s3 = inlined_call_operand.vmem [shape: f32[128,128], index: 3, kind: input, shape index: {}]   ;;  %s829_s5 = inlined_call_operand.vmem [shape: f32[1,128], index: 5, kind: input, shape index: {}]   ;;  %s830_s6 = inlined_call_operand.<no memory space> [shape: f32[1,1], index: 6, kind: input, shape index: {}]   ;;  %s831_s7 = inlined_call_operand.vmem [shape: f32[1,128], index: 7, kind: output, shape index: {}]  }
   0x1   :  { %v42_v0 = vld [vmem:[%s824_s0 + $0x78] sm:$0xff]  ;;  %v41_v1 = vld [vmem:[%s824_s0 + $0x70] sm:$0xff]  ;;  %509 = vset.pattern.permute.xlu0 %v516_v2  ;;  %510 = vset.pattern.permute.xlu1 %v516_v2  ;;  %v40_v4 = vld [vmem:[%s824_s0 + $0x68] sm:$0xff] }
   0x2   :  { %155 = vmatpush.msra.mxu0 %v42_v0  ;;  %476 = vmatpush.msra.mxu3 %v42_v0  ;;  %v74_v3 = vld [vmem:[%s825_s2 + $0x78] sm:$0xff]  ;;  %v72_v5 = vld [vmem:[%s825_s2 + $0x68] sm:$0xff]  ;;  %v39_v6 = vld [vmem:[%s824_s0 + $0x60] sm:$0xff] }
   0x3   :  { %152 = vperm.xlu0 %509, %v74_v3   ;;  %511 = vset.pattern.permute.xlu2 %v516_v2  ;;  %v38_v7 = vld [vmem:[%s824_s0 + $0x58] sm:$0xff]  ;;  %v73_v8 = vld [vmem:[%s825_s2 + $0x70] sm:$0xff]  ;;  %v71_v10 = vld [vmem:[%s825_s2 + $0x60] sm:$0xff] }
   0x4   :  { %156 = vmatpush.msra.mxu0 %v41_v1  ;;  %477 = vmatpush.msra.mxu3 %v41_v1  ;;  %v37_v9 = vld [vmem:[%s824_s0 + $0x50] sm:$0xff]  ;;  %v36_v11 = vld [vmem:[%s824_s0 + $0x48] sm:$0xff]  ;;  %v70_v12 = vld [vmem:[%s825_s2 + $0x58] sm:$0xff] }
   0x5   :  { %142 = vperm.xlu1 %510, %v72_v5   ;;  %v35_v13 = vld [vmem:[%s824_s0 + $0x40] sm:$0xff]  ;;  %132 = vperm.xlu2 %511, %v70_v12   ;;  %v34_v14 = vld [vmem:[%s824_s0 + $0x38] sm:$0xff]  ;;  %v68_v15 = vld [vmem:[%s825_s2 + $0x48] sm:$0xff] }
   0x6   :  { %157 = vmatpush.msra.mxu0 %v40_v4  ;;  %478 = vmatpush.msra.mxu3 %v40_v4  ;;  %v33_v16 = vld [vmem:[%s824_s0 + $0x30] sm:$0xff]  ;;  %v67_v17 = vld [vmem:[%s825_s2 + $0x40] sm:$0xff]  ;;  %v32_v19 = vld [vmem:[%s824_s0 + $0x28] sm:$0xff] }
   0x7   :  { %v69_v18 = vld [vmem:[%s825_s2 + $0x50] sm:$0xff]  ;;  %v31_v20 = vld [vmem:[%s824_s0 + $0x20] sm:$0xff]  ;;  %v30_v21 = vld [vmem:[%s824_s0 + $0x18] sm:$0xff] }
   0x8   :  { %158 = vmatpush.msra.mxu0 %v39_v6  ;;  %479 = vmatpush.msra.mxu3 %v39_v6  ;;  %v65_v22 = vld [vmem:[%s825_s2 + $0x30] sm:$0xff]  ;;  %v64_v24 = vld [vmem:[%s825_s2 + $0x28] sm:$0xff]  ;;  %v66_v25 = vld [vmem:[%s825_s2 + $0x38] sm:$0xff] }
   0x9   :  { %v29_v23 = vld [vmem:[%s824_s0 + $0x10] sm:$0xff]  ;;  %v28_v26 = vld [vmem:[%s824_s0 + $0x8] sm:$0xff]  ;;  %v27_v27 = vld [vmem:[%s824_s0] sm:$0xff] }
   0xa   :  { %159 = vmatpush.msra.mxu0 %v38_v7  ;;  %480 = vmatpush.msra.mxu3 %v38_v7  ;;  %v43_v28 = vld [vmem:[%s826_s1] sm:$0xff]  ;;  %v52_v29 = vld [vmem:[%s826_s1 + $0x48] sm:$0xff]  ;;  %v62_v30 = vld [vmem:[%s825_s2 + $0x18] sm:$0xff] }
   0xb   :  { %147 = vperm.xlu0 %509, %v73_v8   ;;  %v61_v31 = vld [vmem:[%s825_s2 + $0x10] sm:$0xff]  ;;  %v63_v32 = vld [vmem:[%s825_s2 + $0x20] sm:$0xff]  ;;  %v44_v33 = vld [vmem:[%s826_s1 + $0x8] sm:$0xff] }
   0xc   :  { %160 = vmatpush.msra.mxu0 %v37_v9  ;;  %481 = vmatpush.msra.mxu3 %v37_v9  ;;  %v53_v34 = vld [vmem:[%s826_s1 + $0x50] sm:$0xff]  ;;  %v59_v35 = vld [vmem:[%s825_s2] sm:$0xff]  ;;  %v267_v36 = vld [vmem:[%s827_s4 + $0x78] sm:$0xff] }
   0xd   :  { %137 = vperm.xlu1 %510, %v71_v10   ;;  %127 = vperm.xlu2 %511, %v69_v18   ;;  %v60_v37 = vld [vmem:[%s825_s2 + $0x8] sm:$0xff]  ;;  %v45_v38 = vld [vmem:[%s826_s1 + $0x10] sm:$0xff]  ;;  %v54_v39 = vld [vmem:[%s826_s1 + $0x58] sm:$0xff] }
   0xe   :  { %161 = vmatpush.msra.mxu0 %v36_v11  ;;  %482 = vmatpush.msra.mxu3 %v36_v11  ;;  %v265_v40 = vld [vmem:[%s827_s4 + $0x68] sm:$0xff]  ;;  %v264_v41 = vld [vmem:[%s827_s4 + $0x60] sm:$0xff]  ;;  %v266_v42 = vld [vmem:[%s827_s4 + $0x70] sm:$0xff] }
   0xf   :  { %v46_v43 = vld [vmem:[%s826_s1 + $0x18] sm:$0xff]  ;;  %v55_v44 = vld [vmem:[%s826_s1 + $0x60] sm:$0xff]  ;;  %v262_v45 = vld [vmem:[%s827_s4 + $0x50] sm:$0xff] }
  0x10   :  { %162 = vmatpush.msra.mxu0 %v35_v13  ;;  %483 = vmatpush.msra.mxu3 %v35_v13  ;;  %v261_v46 = vld [vmem:[%s827_s4 + $0x48] sm:$0xff]  ;;  %v263_v47 = vld [vmem:[%s827_s4 + $0x58] sm:$0xff]  ;;  %v47_v48 = vld [vmem:[%s826_s1 + $0x20] sm:$0xff] }
  0x11   :  { %v56_v49 = vld [vmem:[%s826_s1 + $0x68] sm:$0xff]  ;;  %v259_v50 = vld [vmem:[%s827_s4 + $0x38] sm:$0xff]  ;;  %v258_v51 = vld [vmem:[%s827_s4 + $0x30] sm:$0xff] }
  0x12   :  { %163 = vmatpush.msra.mxu0 %v34_v14  ;;  %484 = vmatpush.msra.mxu3 %v34_v14  ;;  %v260_v52 = vld [vmem:[%s827_s4 + $0x40] sm:$0xff]  ;;  %v48_v53 = vld [vmem:[%s826_s1 + $0x28] sm:$0xff]  ;;  %v57_v54 = vld [vmem:[%s826_s1 + $0x70] sm:$0xff] }
  0x13   :  { %122 = vperm.xlu0 %509, %v68_v15   ;;  %v256_v55 = vld [vmem:[%s827_s4 + $0x20] sm:$0xff]  ;;  %v255_v56 = vld [vmem:[%s827_s4 + $0x18] sm:$0xff]  ;;  %v257_v57 = vld [vmem:[%s827_s4 + $0x28] sm:$0xff] }
  0x14   :  { %164 = vmatpush.msra.mxu0 %v33_v16  ;;  %485 = vmatpush.msra.mxu3 %v33_v16  ;;  %v49_v58 = vld [vmem:[%s826_s1 + $0x30] sm:$0xff]  ;;  %v58_v59 = vld [vmem:[%s826_s1 + $0x78] sm:$0xff]  ;;  %v253_v60 = vld [vmem:[%s827_s4 + $0x8] sm:$0xff] }
  0x15   :  { %117 = vperm.xlu1 %510, %v67_v17   ;;  %112 = vperm.xlu2 %511, %v66_v25   ;;  %v252_v61 = vld [vmem:[%s827_s4] sm:$0xff]  ;;  %v254_v62 = vld [vmem:[%s827_s4 + $0x10] sm:$0xff]  ;;  %v50_v63 = vld [vmem:[%s826_s1 + $0x38] sm:$0xff] }
  0x16   :  { %165 = vmatpush.msra.mxu0 %v32_v19  ;;  %486 = vmatpush.msra.mxu3 %v32_v19  ;;  %v51_v0 = vld [vmem:[%s826_s1 + $0x40] sm:$0xff] }
  0x18   :  { %166 = vmatpush.msra.mxu0 %v31_v20  ;;  %487 = vmatpush.msra.mxu3 %v31_v20 }
  0x1a   :  { %167 = vmatpush.msra.mxu0 %v30_v21  ;;  %488 = vmatpush.msra.mxu3 %v30_v21 }
  0x1b   :  { %107 = vperm.xlu0 %509, %v65_v22  }
  0x1c   :  { %168 = vmatpush.msra.mxu0 %v29_v23  ;;  %489 = vmatpush.msra.mxu3 %v29_v23 }
  0x1d   :  { %102 = vperm.xlu1 %510, %v64_v24   ;;  %97 = vperm.xlu2 %511, %v63_v32  }
  0x1e   :  { %169 = vmatpush.msra.mxu0 %v28_v26  ;;  %490 = vmatpush.msra.mxu3 %v28_v26 }
  0x20   :  { %170 = vmatpush.msra.mxu0 %v27_v27  ;;  %491 = vmatpush.msra.mxu3 %v27_v27 }
  0x21   :  { %171 = vmatmul.f32.vlgmr.msra.gmra.mxu0 %v43_v28  ;;  %198 = vmatmul.f32.vlgmr.msra.gmra.mxu3 %v52_v29 }
  0x23   :  { %92 = vperm.xlu0 %509, %v62_v30  }
  0x25   :  { %87 = vperm.xlu1 %510, %v61_v31   ;;  %82 = vperm.xlu2 %511, %v60_v37  }
  0x29   :  { %174 = vmatmul.f32.gmra.mxu0 %v44_v33  ;;  %201 = vmatmul.f32.gmra.mxu3 %v53_v34 }
  0x2b   :  { %77 = vperm.xlu0 %509, %v59_v35  }
  0x2d   :  { %345 = vperm.xlu1 %510, %v267_v36   ;;  %340 = vperm.xlu2 %511, %v266_v42  }
  0x31   :  { %177 = vmatmul.f32.gmra.mxu0 %v45_v38  ;;  %204 = vmatmul.f32.gmra.mxu3 %v54_v39 }
  0x33   :  { %335 = vperm.xlu0 %509, %v265_v40  }
  0x35   :  { %330 = vperm.xlu1 %510, %v264_v41   ;;  %325 = vperm.xlu2 %511, %v263_v47  }
  0x39   :  { %180 = vmatmul.f32.gmra.mxu0 %v46_v43  ;;  %207 = vmatmul.f32.gmra.mxu3 %v55_v44 }
  0x3b   :  { %320 = vperm.xlu0 %509, %v262_v45  }
  0x3d   :  { %315 = vperm.xlu1 %510, %v261_v46   ;;  %310 = vperm.xlu2 %511, %v260_v52  }
  0x41   :  { %183 = vmatmul.f32.gmra.mxu0 %v47_v48  ;;  %210 = vmatmul.f32.gmra.mxu3 %v56_v49 }
  0x43   :  { %305 = vperm.xlu0 %509, %v259_v50  }
  0x45   :  { %300 = vperm.xlu1 %510, %v258_v51   ;;  %295 = vperm.xlu2 %511, %v257_v57  }
  0x49   :  { %186 = vmatmul.f32.gmra.mxu0 %v48_v53  ;;  %213 = vmatmul.f32.gmra.mxu3 %v57_v54 }
  0x4b   :  { %290 = vperm.xlu0 %509, %v256_v55  }
  0x4d   :  { %285 = vperm.xlu1 %510, %v255_v56   ;;  %280 = vperm.xlu2 %511, %v254_v62  }
  0x51   :  { %189 = vmatmul.f32.gmra.mxu0 %v49_v58  ;;  %216 = vmatmul.f32.gmra.mxu3 %v58_v59 }
  0x53   :  { %275 = vperm.xlu0 %509, %v253_v60  }
  0x55   :  { %270 = vperm.xlu1 %510, %v252_v61  }
  0x59   :  { %192 = vmatmul.f32.gmra.mxu0 %v50_v63 }
  0x5f   :  { %v133_v13 = vpop.permute.xlu2 %132 }
  0x61   :  { %195 = vmatmul.f32.gmra.mxu0 %v51_v0 }
  0x67   :  { %v128_v20 = vpop.permute.xlu2 %127 }
  0x6f   :  { %v113_v31 = vpop.permute.xlu2 %112 }
  0x75   :  { %v153_v8 = vpop.permute.xlu0 %152 }
  0x77   :  { %v143_v11 = vpop.permute.xlu1 %142  ;;  %v98_v45 = vpop.permute.xlu2 %97 }
  0x7d   :  { %v148_v14 = vpop.permute.xlu0 %147 }
  0x7f   :  { %v138_v17 = vpop.permute.xlu1 %137  ;;  %v83_v58 = vpop.permute.xlu2 %82 }
  0x85   :  { %v123_v19 = vpop.permute.xlu0 %122 }
  0x87   :  { %v118_v27 = vpop.permute.xlu1 %117 }
  0x8d   :  { %v108_v30 = vpop.permute.xlu0 %107 }
  0x8f   :  { %v103_v41 = vpop.permute.xlu1 %102 }
  0x95   :  { %v93_v44 = vpop.permute.xlu0 %92 }
  0x97   :  { %v88_v54 = vpop.permute.xlu1 %87 }
  0x9d   :  { %v78_v57 = vpop.permute.xlu0 %77 }
  0x9e   :  { %v749_v1 = vpop.f32.mrf.mxu0 }
  0x9f   :  { %v173_v61 = vadd.f32 %v749_v1, %v78_v57  ;;  %v237_v1 = vld [vmem:[%s828_s3 + $0x8] sm:$0xff] }
  0xa1   :  { %v220_v0 = vmax.f32 %v173_v61, 0.0 }
  0xa4   :  { %v199_v2 = vpop.f32.mrf.mxu3 }
  0xa5   :  { %v200_v37 = vadd.f32 %v199_v2, %v123_v19  ;;  %v236_v2 = vld [vmem:[%s828_s3] sm:$0xff] }
  0xa6   :  { %v751_v3 = vpop.f32.mrf.mxu0 }
  0xa7   :  { %v229_v42 = vmax.f32 %v200_v37, 0.0  ;;  %v176_v59 = vadd.f32 %v751_v3, %v83_v58  ;;  %v245_v3 = vld [vmem:[%s828_s3 + $0x48] sm:$0xff] }
  0xa9   :  { %v221_v63 = vmax.f32 %v176_v59, 0.0 }
  0xac   :  { %v202_v4 = vpop.f32.mrf.mxu3 }
  0xad   :  { %v203_v34 = vadd.f32 %v202_v4, %v128_v20  ;;  %v246_v4 = vld [vmem:[%s828_s3 + $0x50] sm:$0xff] }
  0xae   :  { %v753_v5 = vpop.f32.mrf.mxu0 }
  0xaf   :  { %v230_v39 = vmax.f32 %v203_v34, 0.0  ;;  %v179_v55 = vadd.f32 %v753_v5, %v88_v54  ;;  %v238_v5 = vld [vmem:[%s828_s3 + $0x10] sm:$0xff] }
  0xb1   :  { %v222_v62 = vmax.f32 %v179_v55, 0.0 }
  0xb4   :  { %v205_v6 = vpop.f32.mrf.mxu3 }
  0xb5   :  { %v206_v32 = vadd.f32 %v205_v6, %v133_v13  ;;  %v247_v6 = vld [vmem:[%s828_s3 + $0x58] sm:$0xff]  ;;  %v242_v13 = vld [vmem:[%s828_s3 + $0x30] sm:$0xff] }
  0xb6   :  { %v755_v7 = vpop.f32.mrf.mxu0 }
  0xb7   :  { %v231_v38 = vmax.f32 %v206_v32, 0.0  ;;  %v182_v52 = vadd.f32 %v755_v7, %v93_v44  ;;  %v239_v7 = vld [vmem:[%s828_s3 + $0x18] sm:$0xff] }
  0xb9   :  { %v223_v60 = vmax.f32 %v182_v52, 0.0 }
  0xbc   :  { %v208_v9 = vpop.f32.mrf.mxu3 }
  0xbd   :  { %v209_v28 = vadd.f32 %v208_v9, %v138_v17  ;;  %v240_v9 = vld [vmem:[%s828_s3 + $0x20] sm:$0xff] }
  0xbe   :  { %v184_v10 = vpop.f32.mrf.mxu0 }
  0xbf   :  { %v232_v35 = vmax.f32 %v209_v28, 0.0  ;;  %v185_v50 = vadd.f32 %v184_v10, %v98_v45  ;;  %v249_v10 = vld [vmem:[%s828_s3 + $0x68] sm:$0xff] }
  0xc1   :  { %v224_v56 = vmax.f32 %v185_v50, 0.0 }
  0xc4   :  { %v211_v12 = vpop.f32.mrf.mxu3 }
  0xc5   :  { %v212_v25 = vadd.f32 %v211_v12, %v143_v11  ;;  %v241_v11 = vld [vmem:[%s828_s3 + $0x28] sm:$0xff]  ;;  %v250_v12 = vld [vmem:[%s828_s3 + $0x70] sm:$0xff] }
  0xc6   :  { %v187_v15 = vpop.f32.mrf.mxu0 }
  0xc7   :  { %v233_v33 = vmax.f32 %v212_v25, 0.0  ;;  %v188_v48 = vadd.f32 %v187_v15, %v103_v41  ;;  %v243_v15 = vld [vmem:[%s828_s3 + $0x38] sm:$0xff]  ;;  %v346_v25 = vpop.permute.xlu1 %345 }
  0xc9   :  { %v225_v53 = vmax.f32 %v188_v48, 0.0 }
  0xcc   :  { %v214_v16 = vpop.f32.mrf.mxu3 }
  0xcd   :  { %v215_v22 = vadd.f32 %v214_v16, %v148_v14  ;;  %v251_v14 = vld [vmem:[%s828_s3 + $0x78] sm:$0xff]  ;;  %v244_v16 = vld [vmem:[%s828_s3 + $0x40] sm:$0xff] }
  0xce   :  { %v190_v18 = vpop.f32.mrf.mxu0 }
  0xcf   :  { %v234_v29 = vmax.f32 %v215_v22, 0.0  ;;  %v191_v46 = vadd.f32 %v190_v18, %v108_v30 }
  0xd1   :  { %v226_v51 = vmax.f32 %v191_v46, 0.0 }
  0xd4   :  { %v217_v21 = vpop.f32.mrf.mxu3 }
  0xd5   :  { %v218_v23 = vadd.f32 %v217_v21, %v153_v8  ;;  %v248_v8 = vld [vmem:[%s828_s3 + $0x60] sm:$0xff] }
  0xd6   :  { %v193_v24 = vpop.f32.mrf.mxu0 }
  0xd7   :  { %v235_v26 = vmax.f32 %v218_v23, 0.0  ;;  %v194_v43 = vadd.f32 %v193_v24, %v113_v31  ;;  %v331_v31 = vpop.permute.xlu1 %330 }
  0xd9   :  { %348 = vmatpush.msra.mxu1 %v235_v26  ;;  %492 = vmatpush.msra.mxu2 %v235_v26  ;;  %v227_v49 = vmax.f32 %v194_v43, 0.0 }
  0xdb   :  { %349 = vmatpush.msra.mxu1 %v234_v29  ;;  %493 = vmatpush.msra.mxu2 %v234_v29  ;;  %v336_v29 = vpop.permute.xlu0 %335 }
  0xdd   :  { %350 = vmatpush.msra.mxu1 %v233_v33  ;;  %494 = vmatpush.msra.mxu2 %v233_v33 }
  0xde   :  { %v196_v36 = vpop.f32.mrf.mxu0 }
  0xdf   :  { %351 = vmatpush.msra.mxu1 %v232_v35  ;;  %495 = vmatpush.msra.mxu2 %v232_v35  ;;  %v197_v40 = vadd.f32 %v196_v36, %v118_v27  ;;  %v341_v27 = vpop.permute.xlu2 %340  ;;  %v316_v36 = vpop.permute.xlu1 %315 }
  0xe1   :  { %352 = vmatpush.msra.mxu1 %v231_v38  ;;  %496 = vmatpush.msra.mxu2 %v231_v38  ;;  %v228_v47 = vmax.f32 %v197_v40, 0.0 }
  0xe3   :  { %353 = vmatpush.msra.mxu1 %v230_v39  ;;  %497 = vmatpush.msra.mxu2 %v230_v39  ;;  %v321_v35 = vpop.permute.xlu0 %320 }
  0xe5   :  { %354 = vmatpush.msra.mxu1 %v229_v42  ;;  %498 = vmatpush.msra.mxu2 %v229_v42 }
  0xe7   :  { %355 = vmatpush.msra.mxu1 %v228_v47  ;;  %499 = vmatpush.msra.mxu2 %v228_v47  ;;  %v326_v33 = vpop.permute.xlu2 %325 }
  0xe9   :  { %356 = vmatpush.msra.mxu1 %v227_v49  ;;  %500 = vmatpush.msra.mxu2 %v227_v49  ;;  %v301_v49 = vpop.permute.xlu1 %300 }
  0xeb   :  { %357 = vmatpush.msra.mxu1 %v226_v51  ;;  %501 = vmatpush.msra.mxu2 %v226_v51  ;;  %v306_v46 = vpop.permute.xlu0 %305 }
  0xed   :  { %358 = vmatpush.msra.mxu1 %v225_v53  ;;  %502 = vmatpush.msra.mxu2 %v225_v53 }
  0xef   :  { %359 = vmatpush.msra.mxu1 %v224_v56  ;;  %503 = vmatpush.msra.mxu2 %v224_v56  ;;  %v311_v43 = vpop.permute.xlu2 %310 }
  0xf1   :  { %360 = vmatpush.msra.mxu1 %v223_v60  ;;  %504 = vmatpush.msra.mxu2 %v223_v60 }
  0xf3   :  { %361 = vmatpush.msra.mxu1 %v222_v62  ;;  %505 = vmatpush.msra.mxu2 %v222_v62  ;;  %v291_v60 = vpop.permute.xlu0 %290 }
  0xf5   :  { %362 = vmatpush.msra.mxu1 %v221_v63  ;;  %506 = vmatpush.msra.mxu2 %v221_v63  ;;  %v286_v63 = vpop.permute.xlu1 %285 }
  0xf7   :  { %363 = vmatpush.msra.mxu1 %v220_v0  ;;  %507 = vmatpush.msra.mxu2 %v220_v0  ;;  %v296_v57 = vpop.permute.xlu2 %295 }
  0xf8   :  { %364 = vmatmul.f32.vlgmr.msra.gmra.mxu1 %v236_v2  ;;  %391 = vmatmul.f32.vlgmr.msra.gmra.mxu2 %v245_v3 }
 0x100   :  { %367 = vmatmul.f32.gmra.mxu1 %v237_v1  ;;  %394 = vmatmul.f32.gmra.mxu2 %v246_v4 }
 0x108   :  { %370 = vmatmul.f32.gmra.mxu1 %v238_v5  ;;  %397 = vmatmul.f32.gmra.mxu2 %v247_v6  ;;  %v281_v6 = vpop.permute.xlu2 %280 }
 0x110   :  { %373 = vmatmul.f32.gmra.mxu1 %v239_v7  ;;  %400 = vmatmul.f32.gmra.mxu2 %v248_v8 }
 0x118   :  { %376 = vmatmul.f32.gmra.mxu1 %v240_v9  ;;  %403 = vmatmul.f32.gmra.mxu2 %v249_v10  ;;  %v276_v9 = vpop.permute.xlu0 %275 }
 0x120   :  { %379 = vmatmul.f32.gmra.mxu1 %v241_v11  ;;  %406 = vmatmul.f32.gmra.mxu2 %v250_v12  ;;  %v271_v12 = vpop.permute.xlu1 %270 }
 0x128   :  { %382 = vmatmul.f32.gmra.mxu1 %v242_v13  ;;  %409 = vmatmul.f32.gmra.mxu2 %v251_v14 }
 0x130   :  { %385 = vmatmul.f32.gmra.mxu1 %v243_v15 }
 0x138   :  { %388 = vmatmul.f32.gmra.mxu1 %v244_v16 }
 0x175   :  { %v809_v17 = vpop.f32.mrf.mxu1 }
 0x176   :  { %v366_v13 = vadd.f32 %v809_v17, %v271_v12 }
 0x178   :  { %v413_v16 = vmax.f32 %v366_v13, 0.0 }
 0x17b   :  { %v392_v18 = vpop.f32.mrf.mxu2 }
 0x17c   :  { %v393_v53 = vadd.f32 %v392_v18, %v316_v36  ;;  %v429_v18 = vld [vmem:[%s829_s5] sm:$0x1] }
 0x17d   :  { %v811_v19 = vpop.f32.mrf.mxu1 }
 0x17e   :  { %v422_v58 = vmax.f32 %v393_v53, 0.0  ;;  %v369_v10 = vadd.f32 %v811_v19, %v276_v9  ;;  %v431_v19 = vstv %s830_s6 }
 0x180   :  { %v414_v15 = vmax.f32 %v369_v10, 0.0 }
 0x183   :  { %v395_v20 = vpop.f32.mrf.mxu2 }
 0x184   :  { %v396_v50 = vadd.f32 %v395_v20, %v321_v35 }
 0x185   :  { %v371_v21 = vpop.f32.mrf.mxu1 }
 0x186   :  { %v423_v55 = vmax.f32 %v396_v50, 0.0  ;;  %v372_v7 = vadd.f32 %v371_v21, %v281_v6 }
 0x188   :  { %v415_v14 = vmax.f32 %v372_v7, 0.0 }
 0x18b   :  { %v398_v22 = vpop.f32.mrf.mxu2 }
 0x18c   :  { %v399_v47 = vadd.f32 %v398_v22, %v326_v33 }
 0x18d   :  { %v374_v23 = vpop.f32.mrf.mxu1 }
 0x18e   :  { %v424_v54 = vmax.f32 %v399_v47, 0.0  ;;  %v375_v4 = vadd.f32 %v374_v23, %v286_v63 }
 0x190   :  { %v416_v11 = vmax.f32 %v375_v4, 0.0 }
 0x193   :  { %v401_v24 = vpop.f32.mrf.mxu2 }
 0x194   :  { %v402_v44 = vadd.f32 %v401_v24, %v331_v31 }
 0x195   :  { %v377_v26 = vpop.f32.mrf.mxu1 }
 0x196   :  { %v425_v51 = vmax.f32 %v402_v44, 0.0  ;;  %v378_v3 = vadd.f32 %v377_v26, %v291_v60 }
 0x198   :  { %v417_v8 = vmax.f32 %v378_v3, 0.0 }
 0x19b   :  { %v404_v28 = vpop.f32.mrf.mxu2 }
 0x19c   :  { %v405_v41 = vadd.f32 %v404_v28, %v336_v29 }
 0x19d   :  { %v380_v30 = vpop.f32.mrf.mxu1 }
 0x19e   :  { %v426_v48 = vmax.f32 %v405_v41, 0.0  ;;  %v381_v0 = vadd.f32 %v380_v30, %v296_v57 }
 0x1a0   :  { %v418_v5 = vmax.f32 %v381_v0, 0.0 }
 0x1a3   :  { %v407_v32 = vpop.f32.mrf.mxu2 }
 0x1a4   :  { %v408_v38 = vadd.f32 %v407_v32, %v341_v27 }
 0x1a5   :  { %v383_v34 = vpop.f32.mrf.mxu1 }
 0x1a6   :  { %v427_v45 = vmax.f32 %v408_v38, 0.0  ;;  %v384_v61 = vadd.f32 %v383_v34, %v301_v49 }
 0x1a8   :  { %v419_v1 = vmax.f32 %v384_v61, 0.0 }
 0x1ab   :  { %v410_v37 = vpop.f32.mrf.mxu2 }
 0x1ac   :  { %v411_v39 = vadd.f32 %v410_v37, %v346_v25 }
 0x1ad   :  { %v386_v40 = vpop.f32.mrf.mxu1 }
 0x1ae   :  { %v428_v42 = vmax.f32 %v411_v39, 0.0  ;;  %v387_v59 = vadd.f32 %v386_v40, %v306_v46 }
 0x1b0   :  { %432 = vmatpush.msrb.mxu2 %v428_v42  ;;  %v420_v2 = vmax.f32 %v387_v59, 0.0 }
 0x1b2   :  { %433 = vmatpush.msrb.mxu2 %v427_v45 }
 0x1b4   :  { %434 = vmatpush.msrb.mxu2 %v426_v48 }
 0x1b5   :  { %v389_v52 = vpop.f32.mrf.mxu1 }
 0x1b6   :  { %435 = vmatpush.msrb.mxu2 %v425_v51  ;;  %v390_v56 = vadd.f32 %v389_v52, %v311_v43 }
 0x1b8   :  { %436 = vmatpush.msrb.mxu2 %v424_v54  ;;  %v421_v62 = vmax.f32 %v390_v56, 0.0 }
 0x1ba   :  { %437 = vmatpush.msrb.mxu2 %v423_v55 }
 0x1bc   :  { %438 = vmatpush.msrb.mxu2 %v422_v58 }
 0x1be   :  { %439 = vmatpush.msrb.mxu2 %v421_v62 }
 0x1c0   :  { %440 = vmatpush.msrb.mxu2 %v420_v2 }
 0x1c2   :  { %441 = vmatpush.msrb.mxu2 %v419_v1 }
 0x1c4   :  { %442 = vmatpush.msrb.mxu2 %v418_v5 }
 0x1c6   :  { %443 = vmatpush.msrb.mxu2 %v417_v8 }
 0x1c8   :  { %444 = vmatpush.msrb.mxu2 %v416_v11 }
 0x1ca   :  { %445 = vmatpush.msrb.mxu2 %v415_v14 }
 0x1cc   :  { %446 = vmatpush.msrb.mxu2 %v414_v15 }
 0x1ce   :  { %447 = vmatpush.msrb.mxu2 %v413_v16 }
 0x1cf   :  { %448 = vmatmul.f32.vlgmr.msrb.gmra.mxu2 %v429_v18 }
 0x252   :  { %v449_v20 = vpop.f32.mrf.mxu2 }
 0x253   :  { %v450_v21 = vadd.f32 %v449_v20, %v431_v19 }
 0x255   :  { %v452_v22 = vsub.f32 0.0, %v450_v21 }
 0x257   :  { %v453_v17 = vmul.f32 1.442695, %v452_v22 }
 0x259   :  { %512 = vpow2.f32 %v453_v17 }
 0x25f   :  { %v513_v23 = vpop.eup %512 }
 0x260   :  { %v455_v24 = vadd.f32 1.0, %v513_v23 }
 0x262   :  { %514 = vrcp.f32 %v455_v24  ;;  %v467_v28 = vand.u32 2147483648, %v455_v24  ;;  %v465_v30 = vand.u32 2147483647, %v455_v24  ;;  %vm461_vm1 = vweird.f32 %v455_v24 }
 0x264   :  { %v468_v32 = vor.u32 1.1754944e-38, %v467_v28  ;;  %vm466_vm3 = vcmp.eq.f32.partialorder %v465_v30, 8.507059e+37 }
 0x268   :  { %v515_v25 = vpop.eup %514 }
 0x269   :  { %v457_v26 = vmul.f32 %v515_v25, %v455_v24  ;;  %vm462_vm0 = vweird.f32 %v515_v25 }
 0x26a   :  { %vm463_vm2 = vmor %vm461_vm1, %vm462_vm0 }
 0x26b   :  { %v458_v27 = vsub.f32 1.0, %v457_v26 }
 0x26d   :  { %v459_v29 = vmul.f32 %v515_v25, %v458_v27 }
 0x26f   :  { %v460_v31 = vadd.f32 %v515_v25, %v459_v29 }
 0x271   :  { %v464_v33 = vsel %vm463_vm2, %v515_v25, %v460_v31 }
 0x272   :  { %v469_v34 = vsel %vm466_vm3, %v468_v32, %v464_v33 }
 0x273   :  { %471 = vst [vmem:[%s831_s7] sm:$0x1] %v469_v34 }

// kernel: graphsage_forward.4
= control target key start
LH: loop header
LB: loop body
LE: loop exit
PB: predicated region body
PF: predicated region fallthrough
CT: control target
= control target key end

     0   :  { %s1064_s24 = smov 0   ;;  %s1369_s0 = inlined_call_operand.vmem [shape: s8[256,256], index: 0, kind: input, shape index: {}]   ;;  %s1370_s1 = inlined_call_operand.vmem [shape: f32[256,1], index: 1, kind: input, shape index: {}]   ;;  %s1371_s2 = inlined_call_operand.vmem [shape: f32[256,128], index: 2, kind: input, shape index: {}, may-alias: {2,3}]   ;;  %s1372_s3 = inlined_call_operand.vmem [shape: f32[256,128], index: 3, kind: input, shape index: {}, may-alias: {2,3}]   ;;  %s1373_s4 = inlined_call_operand.vmem [shape: f32[128,128], index: 4, kind: input, shape index: {}]   ;;  %s1374_s5 = inlined_call_operand.vmem [shape: f32[128,128], index: 5, kind: input, shape index: {}]   ;;  %s1375_s6 = inlined_call_operand.vmem [shape: f32[1,128], index: 6, kind: input, shape index: {}]   ;;  %s1376_s7 = inlined_call_operand.vmem [shape: f32[256,128], index: 7, kind: output, shape index: {}]  }
   0x1 LB: > { %s985_s25 = sadd.s32 4294967295, %s1021_s24   ;;  %p989_p0 = scmp.ge.s32.totalorder %s1021_s24, 1  ;;  %s1021_s24 = sphi %s1064_s24, %s17_s24  }
   0x2   : > { %p261_p1 = scmp.lt.s32.totalorder %s1021_s24, 3 }
   0x4   : > { %p262_p2 = pnand %p989_p0, %p261_p1 }
   0x5   : > { %s993_s9 = sshll.u32 (!%p262_p2), %s985_s25, 4  ;;  %s990_s20 = sshll.u32 (!%p262_p2), %s985_s25, 2 }
   0x6   : > { %265 = sbr.rel (%p262_p2) target bundleno = 433 (0x1b1), region = 48  ;;  %p312_p3 = scmp.lt.s32.totalorder (!%p262_p2), %s993_s9, 31 }
   0x7   : > { %p305_p4 = scmp.lt.s32.totalorder (!%p262_p2), %s990_s20, 7 }
   0xb   : > { %v416_v0 = vld [vmem:[%s1372_s3 + $0x78] sm:$0xff]  ;;  %v415_v2 = vld [vmem:[%s1372_s3 + $0x70] sm:$0xff]  ;;  %v414_v4 = vld [vmem:[%s1372_s3 + $0x68] sm:$0xff]  ;;  %v1023_v6 = vmov 0   ;;  %s1378_s9 = smov (!%p312_p3, %s993_s9), 31  ;;  %s1380_s20 = smov (!%p305_p4, %s990_s20), 7 }
   0xc   : > { %v432_v1 = vld [vmem:[%s1372_s3 + $0xf8] sm:$0xff]  ;;  %433 = vmatpush.msra.mxu0 %v416_v0  ;;  %v431_v3 = vld [vmem:[%s1372_s3 + $0xf0] sm:$0xff]  ;;  %v430_v5 = vld [vmem:[%s1372_s3 + $0xe8] sm:$0xff]  ;;  %1011 = vset.pattern.permute.xlu0 %v1023_v6  ;;  %s1096_s21 = sshll.u32 %s1378_s9, 3  ;;  %s1001_s28 = sshll.u32 %s1380_s20, 4 }
   0xd   : > { %498 = vmatpush.msra.mxu1 %v432_v1  ;;  %1012 = vset.pattern.permute.xlu1 %v1023_v6  ;;  %v413_v7 = vld [vmem:[%s1372_s3 + $0x60] sm:$0xff]  ;;  %s1102_s26 = scalar_lea.vmem %s1370_s1, %s1096_s21  ;;  %v412_v9 = vld [vmem:[%s1372_s3 + $0x58] sm:$0xff]  ;;  %v411_v12 = vld [vmem:[%s1372_s3 + $0x50] sm:$0xff]  ;;  %s1153_s14 = scalar_lea.vmem %s1369_s0, %s1001_s28 }
   0xe   : > { %434 = vmatpush.msra.mxu0 %v415_v2  ;;  %v429_v8 = vld [vmem:[%s1372_s3 + $0xe0] sm:$0xff]  ;;  %1013 = vset.pattern.permute.xlu2 %v1023_v6  ;;  %v428_v10 = vld [vmem:[%s1372_s3 + $0xd8] sm:$0xff]  ;;  %v427_v13 = vld [vmem:[%s1372_s3 + $0xd0] sm:$0xff]  ;;  %s1293_s20 = scalar_lea.vmem %s1371_s2, %s1096_s21  ;;  %s1333_s29 = scalar_lea.vmem %s1376_s7, %s1096_s21 }
   0xf   : > { %499 = vmatpush.msra.mxu1 %v431_v3  ;;  %v563_v11 = vld [vmem:[%s1102_s26] sm:$0xff]  ;;  %v410_v14 = vld [vmem:[%s1372_s3 + $0x48] sm:$0xff]  ;;  %v565_v16 = vld [vmem:[%s1102_s26 + $0x10] sm:$0xff] }
  0x10   : > { %435 = vmatpush.msra.mxu0 %v414_v4  ;;  %581 = vperm.xlu0 %1011, %v563_v11   ;;  %v426_v15 = vld [vmem:[%s1372_s3 + $0xc8] sm:$0xff]  ;;  %v409_v17 = vld [vmem:[%s1372_s3 + $0x40] sm:$0xff]  ;;  %v408_v20 = vld [vmem:[%s1372_s3 + $0x38] sm:$0xff] }
  0x11   : > { %500 = vmatpush.msra.mxu1 %v430_v5  ;;  %v425_v18 = vld [vmem:[%s1372_s3 + $0xc0] sm:$0xff]  ;;  %591 = vperm.xlu1 %1012, %v565_v16   ;;  %v564_v19 = vld [vmem:[%s1102_s26 + $0x8] sm:$0xff]  ;;  %v424_v21 = vld [vmem:[%s1372_s3 + $0xb8] sm:$0xff] }
  0x12   : > { %436 = vmatpush.msra.mxu0 %v413_v7  ;;  %v407_v22 = vld [vmem:[%s1372_s3 + $0x30] sm:$0xff]  ;;  %v566_v24 = vld [vmem:[%s1102_s26 + $0x18] sm:$0xff]  ;;  %v406_v25 = vld [vmem:[%s1372_s3 + $0x28] sm:$0xff] }
  0x13   : > { %501 = vmatpush.msra.mxu1 %v429_v8  ;;  %v423_v23 = vld [vmem:[%s1372_s3 + $0xb0] sm:$0xff]  ;;  %v422_v26 = vld [vmem:[%s1372_s3 + $0xa8] sm:$0xff]  ;;  %v405_v27 = vld [vmem:[%s1372_s3 + $0x20] sm:$0xff] }
  0x14   : > { %437 = vmatpush.msra.mxu0 %v412_v9  ;;  %v421_v28 = vld [vmem:[%s1372_s3 + $0xa0] sm:$0xff]  ;;  %v569_v29 = vld [vmem:[%s1102_s26 + $0x30] sm:$0xff]  ;;  %v404_v31 = vld [vmem:[%s1372_s3 + $0x18] sm:$0xff] }
  0x15   : > { %502 = vmatpush.msra.mxu1 %v428_v10  ;;  %v329_v30 = vld [vmem:[%s1153_s14] sm:$0xff]  ;;  %v420_v32 = vld [vmem:[%s1372_s3 + $0x98] sm:$0xff]  ;;  %v330_v33 = vld [vmem:[%s1153_s14 + $0x8] sm:$0xff] }
  0x16   : > { %438 = vmatpush.msra.mxu0 %v411_v12  ;;  %v403_v34 = vld [vmem:[%s1372_s3 + $0x10] sm:$0xff]  ;;  %v337_v36 = vunpack.c.0.s8 %v329_v30  ;;  %v338_v37 = vunpack.c.0.s8 %v330_v33  ;;  %v570_v38 = vld [vmem:[%s1102_s26 + $0x38] sm:$0xff]  ;;  %v402_v39 = vld [vmem:[%s1372_s3 + $0x8] sm:$0xff]  ;;  %v339_v46 = vunpack.c.1.s8 %v329_v30  ;;  %v340_v47 = vunpack.c.1.s8 %v330_v33 }
  0x17   : > { %503 = vmatpush.msra.mxu1 %v427_v13  ;;  %v419_v35 = vld [vmem:[%s1372_s3 + $0x90] sm:$0xff]  ;;  %v418_v40 = vld [vmem:[%s1372_s3 + $0x88] sm:$0xff]  ;;  %v401_v41 = vld [vmem:[%s1372_s3] sm:$0xff]  ;;  %v341_v53 = vunpack.c.2.s8 %v329_v30  ;;  %v342_v54 = vunpack.c.2.s8 %v330_v33  ;;  %v343_v60 = vunpack.c.3.s8 %v329_v30  ;;  %v344_v61 = vunpack.c.3.s8 %v330_v33 }
  0x18   : > { %439 = vmatpush.msra.mxu0 %v410_v14  ;;  %586 = vperm.xlu0 %1011, %v564_v19   ;;  %v417_v42 = vld [vmem:[%s1372_s3 + $0x80] sm:$0xff]  ;;  %v369_v43 = vcvt.s32.f32 %v337_v36  ;;  %v572_v44 = vld [vmem:[%s1102_s26 + $0x48] sm:$0xff]  ;;  %v370_v45 = vcvt.s32.f32 %v338_v37  ;;  %v573_v48 = vld [vmem:[%s1102_s26 + $0x50] sm:$0xff]  ;;  %v371_v50 = vcvt.s32.f32 %v339_v46  ;;  %v372_v52 = vcvt.s32.f32 %v340_v47 }
  0x19   : > { %504 = vmatpush.msra.mxu1 %v426_v15  ;;  %596 = vperm.xlu1 %1012, %v566_v24   ;;  %v567_v49 = vld [vmem:[%s1102_s26 + $0x20] sm:$0xff]  ;;  %v576_v55 = vld [vmem:[%s1102_s26 + $0x68] sm:$0xff]  ;;  %v373_v57 = vcvt.s32.f32 %v341_v53  ;;  %v578_v58 = vld [vmem:[%s1102_s26 + $0x78] sm:$0xff]  ;;  %v374_v59 = vcvt.s32.f32 %v342_v54  ;;  %v375_v63 = vcvt.s32.f32 %v343_v60  ;;  %v376_v0 = vcvt.s32.f32 %v344_v61 }
  0x1a   : > { %440 = vmatpush.msra.mxu0 %v409_v17  ;;  %601 = vperm.xlu2 %1013, %v567_v49   ;;  %v575_v51 = vld [vmem:[%s1102_s26 + $0x60] sm:$0xff]  ;;  %v568_v56 = vld [vmem:[%s1102_s26 + $0x28] sm:$0xff]  ;;  %v331_v1 = vld [vmem:[%s1153_s14 + $0x10] sm:$0xff] }
  0x1b   : > { %505 = vmatpush.msra.mxu1 %v425_v18  ;;  %v571_v62 = vld [vmem:[%s1102_s26 + $0x40] sm:$0xff]  ;;  %v332_v2 = vld [vmem:[%s1153_s14 + $0x18] sm:$0xff]  ;;  %v345_v3 = vunpack.c.0.s8 %v331_v1  ;;  %v347_v8 = vunpack.c.1.s8 %v331_v1  ;;  %v577_v10 = vld [vmem:[%s1102_s26 + $0x70] sm:$0xff]  ;;  %v349_v13 = vunpack.c.2.s8 %v331_v1  ;;  %v351_v17 = vunpack.c.3.s8 %v331_v1 }
  0x1c   : > { %441 = vmatpush.msra.mxu0 %v408_v20  ;;  %v346_v4 = vunpack.c.0.s8 %v332_v2  ;;  %v574_v5 = vld [vmem:[%s1102_s26 + $0x58] sm:$0xff]  ;;  %v348_v9 = vunpack.c.1.s8 %v332_v2  ;;  %v350_v14 = vunpack.c.2.s8 %v332_v2  ;;  %v352_v18 = vunpack.c.3.s8 %v332_v2  ;;  %v716_v47 = vld [vmem:[%s1374_s5 + $0x48] sm:$0xff]  ;;  %v711_v1 = vld [vmem:[%s1374_s5 + $0x20] sm:$0xff] }
  0x1d   : > { %506 = vmatpush.msra.mxu1 %v424_v21  ;;  %v377_v6 = vcvt.s32.f32 %v345_v3  ;;  %v379_v11 = vcvt.s32.f32 %v347_v8  ;;  %v381_v15 = vcvt.s32.f32 %v349_v13  ;;  %v383_v19 = vcvt.s32.f32 %v351_v17  ;;  %v333_v21 = vld [vmem:[%s1153_s14 + $0x20] sm:$0xff]  ;;  %v706_v30 = vld [vmem:[%s1373_s4 + $0x78] sm:$0xff]  ;;  %v712_v60 = vld [vmem:[%s1374_s5 + $0x28] sm:$0xff] }
  0x1e   : > { %442 = vmatpush.msra.mxu0 %v407_v22  ;;  %v378_v7 = vcvt.s32.f32 %v346_v4  ;;  %v380_v12 = vcvt.s32.f32 %v348_v9  ;;  %v382_v16 = vcvt.s32.f32 %v350_v14  ;;  %v384_v20 = vcvt.s32.f32 %v352_v18  ;;  %v334_v22 = vld [vmem:[%s1153_s14 + $0x28] sm:$0xff]  ;;  %788 = vmatpush.msra.mxu3 %v706_v30  ;;  %v714_v53 = vld [vmem:[%s1374_s5 + $0x38] sm:$0xff]  ;;  %v695_v2 = vld [vmem:[%s1373_s4 + $0x20] sm:$0xff] }
  0x1f   : > { %507 = vmatpush.msra.mxu1 %v423_v23  ;;  %v353_v23 = vunpack.c.0.s8 %v333_v21  ;;  %v354_v24 = vunpack.c.0.s8 %v334_v22  ;;  %v357_v37 = vunpack.c.2.s8 %v333_v21  ;;  %v359_v49 = vunpack.c.3.s8 %v333_v21  ;;  %v698_v54 = vld [vmem:[%s1373_s4 + $0x38] sm:$0xff]  ;;  %v693_v8 = vld [vmem:[%s1373_s4 + $0x10] sm:$0xff]  ;;  %v708_v9 = vld [vmem:[%s1374_s5 + $0x8] sm:$0xff] }
  0x20   : > { %443 = vmatpush.msra.mxu0 %v406_v25  ;;  %611 = vperm.xlu0 %1011, %v569_v29   ;;  %v722_v29 = vld [vmem:[%s1374_s5 + $0x78] sm:$0xff]  ;;  %v691_v13 = vld [vmem:[%s1373_s4] sm:$0xff] }
  0x21   : > { %508 = vmatpush.msra.mxu1 %v422_v26  ;;  %616 = vperm.xlu1 %1012, %v570_v38   ;;  %v385_v25 = vcvt.s32.f32 %v353_v23  ;;  %v386_v26 = vcvt.s32.f32 %v354_v24  ;;  %v358_v38 = vunpack.c.2.s8 %v334_v22  ;;  %v336_v61 = vld [vmem:[%s1153_s14 + $0x38] sm:$0xff] }
  0x22   : > { %444 = vmatpush.msra.mxu0 %v405_v27  ;;  %606 = vperm.xlu2 %1013, %v568_v56   ;;  %v355_v27 = vunpack.c.1.s8 %v333_v21  ;;  %v391_v56 = vcvt.s32.f32 %v359_v49  ;;  %v710_v3 = vld [vmem:[%s1374_s5 + $0x18] sm:$0xff]  ;;  %v364_v14 = vunpack.c.1.s8 %v336_v61  ;;  %v368_v24 = vunpack.c.3.s8 %v336_v61 }
  0x23   : > { %509 = vmatpush.msra.mxu1 %v421_v28  ;;  %v356_v28 = vunpack.c.1.s8 %v334_v22  ;;  %723 = vmatpush.msra.mxu2 %v722_v29  ;;  %v390_v46 = vcvt.s32.f32 %v358_v38  ;;  %v694_v4 = vld [vmem:[%s1373_s4 + $0x18] sm:$0xff] }
  0x24   : > { %445 = vmatpush.msra.mxu0 %v404_v31  ;;  %v721_v31 = vld [vmem:[%s1374_s5 + $0x70] sm:$0xff]  ;;  %v387_v33 = vcvt.s32.f32 %v355_v27  ;;  %v396_v17 = vcvt.s32.f32 %v364_v14  ;;  %v400_v27 = vcvt.s32.f32 %v368_v24  ;;  %v688_v24 = vld [vmem:[%s1293_s20 + $0x68] sm:$0xff] }
  0x25   : > { %510 = vmatpush.msra.mxu1 %v420_v32  ;;  %v705_v32 = vld [vmem:[%s1373_s4 + $0x70] sm:$0xff]  ;;  %v388_v36 = vcvt.s32.f32 %v356_v28  ;;  %724 = vmatpush.msra.mxu2 %v721_v31  ;;  %v678_v28 = vld [vmem:[%s1293_s20 + $0x18] sm:$0xff] }
  0x26   : > { %446 = vmatpush.msra.mxu0 %v403_v34  ;;  %v720_v34 = vld [vmem:[%s1374_s5 + $0x68] sm:$0xff]  ;;  %789 = vmatpush.msra.mxu3 %v705_v32 }
  0x27   : > { %511 = vmatpush.msra.mxu1 %v419_v35  ;;  %v704_v35 = vld [vmem:[%s1373_s4 + $0x68] sm:$0xff]  ;;  %725 = vmatpush.msra.mxu2 %v720_v34  ;;  %v679_v34 = vld [vmem:[%s1293_s20 + $0x20] sm:$0xff] }
  0x28   : > { %447 = vmatpush.msra.mxu0 %v402_v39  ;;  %626 = vperm.xlu0 %1011, %v572_v44   ;;  %v719_v39 = vld [vmem:[%s1374_s5 + $0x60] sm:$0xff]  ;;  %v701_v44 = vld [vmem:[%s1373_s4 + $0x50] sm:$0xff] }
  0x29   : > { %512 = vmatpush.msra.mxu1 %v418_v40  ;;  %631 = vperm.xlu1 %1012, %v573_v48   ;;  %v703_v40 = vld [vmem:[%s1373_s4 + $0x60] sm:$0xff]  ;;  %v700_v48 = vld [vmem:[%s1373_s4 + $0x48] sm:$0xff] }
  0x2a   : > { %448 = vmatpush.msra.mxu0 %v401_v41  ;;  %621 = vperm.xlu2 %1013, %v571_v62   ;;  %v718_v41 = vld [vmem:[%s1374_s5 + $0x58] sm:$0xff]  ;;  %v696_v62 = vld [vmem:[%s1373_s4 + $0x28] sm:$0xff] }
  0x2b   : > { %513 = vmatpush.msra.mxu1 %v417_v42  ;;  %449 = vmatmul.f32.vlgmr.msra.gmra.mxu0 %v369_v43  ;;  %v702_v42 = vld [vmem:[%s1373_s4 + $0x58] sm:$0xff]  ;;  %v717_v43 = vld [vmem:[%s1374_s5 + $0x50] sm:$0xff] }
  0x2c   : > { %514 = vmatmul.f32.vlgmr.msra.gmra.mxu1 %v370_v45  ;;  %790 = vmatpush.msra.mxu3 %v704_v35  ;;  %v389_v45 = vcvt.s32.f32 %v357_v37 }
  0x2d   : > { %726 = vmatpush.msra.mxu2 %v719_v39 }
  0x2e   : > { %791 = vmatpush.msra.mxu3 %v703_v40  ;;  %v680_v40 = vld [vmem:[%s1293_s20 + $0x28] sm:$0xff] }
  0x2f   : > { %727 = vmatpush.msra.mxu2 %v718_v41 }
  0x30   : > { %641 = vperm.xlu0 %1011, %v575_v51   ;;  %792 = vmatpush.msra.mxu3 %v702_v42  ;;  %v715_v51 = vld [vmem:[%s1374_s5 + $0x40] sm:$0xff] }
  0x31   : > { %646 = vperm.xlu1 %1012, %v576_v55   ;;  %728 = vmatpush.msra.mxu2 %v717_v43  ;;  %v713_v55 = vld [vmem:[%s1374_s5 + $0x30] sm:$0xff] }
  0x32   : > { %636 = vperm.xlu2 %1013, %v574_v5   ;;  %793 = vmatpush.msra.mxu3 %v701_v44 }
  0x33   : > { %452 = vmatmul.f32.gmra.mxu0 %v371_v50  ;;  %729 = vmatpush.msra.mxu2 %v716_v47  ;;  %v360_v50 = vunpack.c.3.s8 %v334_v22 }
  0x34   : > { %517 = vmatmul.f32.gmra.mxu1 %v372_v52  ;;  %794 = vmatpush.msra.mxu3 %v700_v48  ;;  %v699_v52 = vld [vmem:[%s1373_s4 + $0x40] sm:$0xff] }
  0x35   : > { %730 = vmatpush.msra.mxu2 %v715_v51 }
  0x36   : > { %795 = vmatpush.msra.mxu3 %v699_v52  ;;  %v682_v52 = vld [vmem:[%s1293_s20 + $0x38] sm:$0xff] }
  0x37   : > { %731 = vmatpush.msra.mxu2 %v714_v53 }
  0x38   : > { %656 = vperm.xlu0 %1011, %v578_v58   ;;  %v392_v58 = vcvt.s32.f32 %v360_v50  ;;  %796 = vmatpush.msra.mxu3 %v698_v54 }
  0x39   : > { %732 = vmatpush.msra.mxu2 %v713_v55 }
  0x3a   : > { %651 = vperm.xlu2 %1013, %v577_v10   ;;  %v692_v10 = vld [vmem:[%s1373_s4 + $0x8] sm:$0xff] }
  0x3b   : > { %455 = vmatmul.f32.gmra.mxu0 %v373_v57  ;;  %v697_v57 = vld [vmem:[%s1373_s4 + $0x30] sm:$0xff]  ;;  %733 = vmatpush.msra.mxu2 %v712_v60 }
  0x3c   : > { %520 = vmatmul.f32.gmra.mxu1 %v374_v59  ;;  %v335_v59 = vld [vmem:[%s1153_s14 + $0x30] sm:$0xff]  ;;  %797 = vmatpush.msra.mxu3 %v697_v57 }
  0x3d   : > { %734 = vmatpush.msra.mxu2 %v711_v1  ;;  %v365_v18 = vunpack.c.2.s8 %v335_v59  ;;  %v367_v23 = vunpack.c.3.s8 %v335_v59 }
  0x3e   : > { %798 = vmatpush.msra.mxu3 %v696_v62 }
  0x3f   : > { %735 = vmatpush.msra.mxu2 %v710_v3  ;;  %v397_v21 = vcvt.s32.f32 %v365_v18  ;;  %v687_v18 = vld [vmem:[%s1293_s20 + $0x60] sm:$0xff] }
  0x40   : > { %799 = vmatpush.msra.mxu3 %v695_v2 }
  0x42   : > { %800 = vmatpush.msra.mxu3 %v694_v4 }
  0x43   : > { %458 = vmatmul.f32.gmra.mxu0 %v375_v63  ;;  %v361_v63 = vunpack.c.0.s8 %v335_v59 }
  0x44   : > { %523 = vmatmul.f32.gmra.mxu1 %v376_v0  ;;  %v362_v0 = vunpack.c.0.s8 %v336_v61  ;;  %801 = vmatpush.msra.mxu3 %v693_v8 }
  0x45   : > { %v393_v5 = vcvt.s32.f32 %v361_v63 }
  0x46   : > { %802 = vmatpush.msra.mxu3 %v692_v10 }
  0x48   : > { %803 = vmatpush.msra.mxu3 %v691_v13 }
  0x4b   : > { %461 = vmatmul.f32.gmra.mxu0 %v377_v6  ;;  %v394_v6 = vcvt.s32.f32 %v362_v0  ;;  %v684_v0 = vld [vmem:[%s1293_s20 + $0x48] sm:$0xff] }
  0x4c   : > { %526 = vmatmul.f32.gmra.mxu1 %v378_v7  ;;  %v709_v7 = vld [vmem:[%s1374_s5 + $0x10] sm:$0xff] }
  0x4d   : > { %736 = vmatpush.msra.mxu2 %v709_v7 }
  0x4f   : > { %737 = vmatpush.msra.mxu2 %v708_v9 }
  0x53   : > { %464 = vmatmul.f32.gmra.mxu0 %v379_v11  ;;  %v707_v11 = vld [vmem:[%s1374_s5] sm:$0xff] }
  0x54   : > { %529 = vmatmul.f32.gmra.mxu1 %v380_v12  ;;  %v363_v12 = vunpack.c.1.s8 %v335_v59  ;;  %738 = vmatpush.msra.mxu2 %v707_v11 }
  0x5b   : > { %467 = vmatmul.f32.gmra.mxu0 %v381_v15  ;;  %v675_v15 = vld [vmem:[%s1293_s20] sm:$0xff] }
  0x5c   : > { %532 = vmatmul.f32.gmra.mxu1 %v382_v16  ;;  %v395_v16 = vcvt.s32.f32 %v363_v12  ;;  %804 = vmatmul.f32.vlgmr.msra.gmra.mxu3 %v675_v15  ;;  %v686_v12 = vld [vmem:[%s1293_s20 + $0x58] sm:$0xff] }
  0x63   : > { %470 = vmatmul.f32.gmra.mxu0 %v383_v19  ;;  %v366_v19 = vunpack.c.2.s8 %v336_v61 }
  0x64   : > { %535 = vmatmul.f32.gmra.mxu1 %v384_v20  ;;  %v676_v20 = vld [vmem:[%s1293_s20 + $0x8] sm:$0xff] }
  0x65   : > { %807 = vmatmul.f32.gmra.mxu3 %v676_v20  ;;  %v398_v22 = vcvt.s32.f32 %v366_v19 }
  0x6b   : > { %473 = vmatmul.f32.gmra.mxu0 %v385_v25  ;;  %v677_v25 = vld [vmem:[%s1293_s20 + $0x10] sm:$0xff] }
  0x6c   : > { %538 = vmatmul.f32.gmra.mxu1 %v386_v26  ;;  %v399_v26 = vcvt.s32.f32 %v367_v23 }
  0x6d   : > { %810 = vmatmul.f32.gmra.mxu3 %v677_v25 }
  0x73   : > { %476 = vmatmul.f32.gmra.mxu0 %v387_v33 }
  0x74   : > { %541 = vmatmul.f32.gmra.mxu1 %v388_v36  ;;  %v602_v54 = vpop.permute.xlu2 %601 }
  0x75   : > { %813 = vmatmul.f32.gmra.mxu3 %v678_v28 }
  0x7b   : > { %479 = vmatmul.f32.gmra.mxu0 %v389_v45 }
  0x7c   : > { %544 = vmatmul.f32.gmra.mxu1 %v390_v46  ;;  %v681_v46 = vld [vmem:[%s1293_s20 + $0x30] sm:$0xff]  ;;  %v607_v62 = vpop.permute.xlu2 %606 }
  0x7d   : > { %816 = vmatmul.f32.gmra.mxu3 %v679_v34 }
  0x82   : > { %v582_v30 = vpop.permute.xlu0 %581 }
  0x83   : > { %482 = vmatmul.f32.gmra.mxu0 %v391_v56  ;;  %v592_v42 = vpop.permute.xlu1 %591 }
  0x84   : > { %547 = vmatmul.f32.gmra.mxu1 %v392_v58  ;;  %v683_v58 = vld [vmem:[%s1293_s20 + $0x40] sm:$0xff] }
  0x85   : > { %819 = vmatmul.f32.gmra.mxu3 %v680_v40 }
  0x8a   : > { %v587_v38 = vpop.permute.xlu0 %586 }
  0x8b   : > { %485 = vmatmul.f32.gmra.mxu0 %v393_v5  ;;  %v597_v50 = vpop.permute.xlu1 %596 }
  0x8c   : > { %550 = vmatmul.f32.gmra.mxu1 %v394_v6  ;;  %v685_v6 = vld [vmem:[%s1293_s20 + $0x50] sm:$0xff] }
  0x8d   : > { %822 = vmatmul.f32.gmra.mxu3 %v681_v46 }
  0x92   : > { %v612_v4 = vpop.permute.xlu0 %611 }
  0x93   : > { %488 = vmatmul.f32.gmra.mxu0 %v395_v16  ;;  %v617_v10 = vpop.permute.xlu1 %616  ;;  %v622_v16 = vpop.permute.xlu2 %621 }
  0x94   : > { %553 = vmatmul.f32.gmra.mxu1 %v396_v17 }
  0x95   : > { %825 = vmatmul.f32.gmra.mxu3 %v682_v52 }
  0x9b   : > { %491 = vmatmul.f32.gmra.mxu0 %v397_v21  ;;  %v632_v28 = vpop.permute.xlu1 %631  ;;  %v637_v34 = vpop.permute.xlu2 %636 }
  0x9c   : > { %556 = vmatmul.f32.gmra.mxu1 %v398_v22  ;;  %v627_v22 = vpop.permute.xlu0 %626 }
  0x9d   : > { %828 = vmatmul.f32.gmra.mxu3 %v683_v58 }
  0xa3   : > { %494 = vmatmul.f32.gmra.mxu0 %v399_v26  ;;  %v647_v46 = vpop.permute.xlu1 %646 }
  0xa4   : > { %559 = vmatmul.f32.gmra.mxu1 %v400_v27  ;;  %v642_v40 = vpop.permute.xlu0 %641 }
  0xa5   : > { %831 = vmatmul.f32.gmra.mxu3 %v684_v0 }
  0xa8   : > { %v450_v29 = vpop.f32.mrf.mxu0 }
  0xa9   : > { %v515_v31 = vpop.f32.mrf.mxu1 }
  0xaa   : > { %v516_v32 = vadd.f32 %v515_v31, %v450_v29 }
  0xac   : > { %v659_v33 = vmul.f32 %v582_v30, %v516_v32  ;;  %v689_v30 = vld [vmem:[%s1293_s20 + $0x70] sm:$0xff] }
  0xad   : > { %834 = vmatmul.f32.gmra.mxu3 %v685_v6 }
  0xae   : > { %739 = vmatmul.f32.vlgmr.msra.gmra.mxu2 %v659_v33 }
  0xb0   : > { %v453_v35 = vpop.f32.mrf.mxu0 }
  0xb1   : > { %v518_v36 = vpop.f32.mrf.mxu1 }
  0xb2   : > { %v519_v37 = vadd.f32 %v518_v36, %v453_v35  ;;  %v690_v36 = vld [vmem:[%s1293_s20 + $0x78] sm:$0xff] }
  0xb4   : > { %v660_v39 = vmul.f32 %v587_v38, %v519_v37 }
  0xb5   : > { %837 = vmatmul.f32.gmra.mxu3 %v686_v12 }
  0xb6   : > { %742 = vmatmul.f32.gmra.mxu2 %v660_v39 }
  0xb8   : > { %v456_v41 = vpop.f32.mrf.mxu0 }
  0xb9   : > { %v521_v43 = vpop.f32.mrf.mxu1 }
  0xba   : > { %v522_v44 = vadd.f32 %v521_v43, %v456_v41 }
  0xbc   : > { %v661_v45 = vmul.f32 %v592_v42, %v522_v44 }
  0xbd   : > { %840 = vmatmul.f32.gmra.mxu3 %v687_v18 }
  0xbe   : > { %745 = vmatmul.f32.gmra.mxu2 %v661_v45 }
  0xc0   : > { %v459_v47 = vpop.f32.mrf.mxu0 }
  0xc1   : > { %v524_v48 = vpop.f32.mrf.mxu1 }
  0xc2   : > { %v525_v49 = vadd.f32 %v524_v48, %v459_v47 }
  0xc4   : > { %v662_v51 = vmul.f32 %v597_v50, %v525_v49 }
  0xc5   : > { %843 = vmatmul.f32.gmra.mxu3 %v688_v24 }
  0xc6   : > { %748 = vmatmul.f32.gmra.mxu2 %v662_v51  ;;  %v652_v51 = vpop.permute.xlu2 %651 }
  0xc8   : > { %v462_v53 = vpop.f32.mrf.mxu0 }
  0xc9   : > { %v527_v55 = vpop.f32.mrf.mxu1 }
  0xca   : > { %v528_v56 = vadd.f32 %v527_v55, %v462_v53 }
  0xcc   : > { %v663_v57 = vmul.f32 %v602_v54, %v528_v56 }
  0xcd   : > { %846 = vmatmul.f32.gmra.mxu3 %v689_v30 }
  0xce   : > { %751 = vmatmul.f32.gmra.mxu2 %v663_v57  ;;  %v657_v57 = vpop.permute.xlu0 %656 }
  0xd0   : > { %v465_v59 = vpop.f32.mrf.mxu0 }
  0xd1   : > { %v530_v60 = vpop.f32.mrf.mxu1 }
  0xd2   : > { %v531_v61 = vadd.f32 %v530_v60, %v465_v59 }
  0xd4   : > { %v664_v63 = vmul.f32 %v607_v62, %v531_v61  ;;  %v1326_v61 = vld [vmem:[%s1375_s6] ss:$0 sm:$0xff] }
  0xd5   : > { %849 = vmatmul.f32.gmra.mxu3 %v690_v36 }
  0xd6   : > { %754 = vmatmul.f32.gmra.mxu2 %v664_v63 }
  0xd8   : > { %v468_v1 = vpop.f32.mrf.mxu0 }
  0xd9   : > { %v533_v2 = vpop.f32.mrf.mxu1 }
  0xda   : > { %v534_v3 = vadd.f32 %v533_v2, %v468_v1 }
  0xdc   : > { %v665_v5 = vmul.f32 %v612_v4, %v534_v3 }
  0xde   : > { %757 = vmatmul.f32.gmra.mxu2 %v665_v5 }
  0xdf   : > { %v805_v45 = vpop.f32.mrf.mxu3 }
  0xe0   : > { %v471_v7 = vpop.f32.mrf.mxu0 }
  0xe1   : > { %v536_v8 = vpop.f32.mrf.mxu1 }
  0xe2   : > { %v537_v9 = vadd.f32 %v536_v8, %v471_v7 }
  0xe4   : > { %v666_v11 = vmul.f32 %v617_v10, %v537_v9 }
  0xe6   : > { %760 = vmatmul.f32.gmra.mxu2 %v666_v11 }
  0xe8   : > { %v474_v13 = vpop.f32.mrf.mxu0  ;;  %v808_v52 = vpop.f32.mrf.mxu3 }
  0xe9   : > { %v539_v14 = vpop.f32.mrf.mxu1 }
  0xea   : > { %v540_v15 = vadd.f32 %v539_v14, %v474_v13 }
  0xec   : > { %v667_v17 = vmul.f32 %v622_v16, %v540_v15 }
  0xee   : > { %763 = vmatmul.f32.gmra.mxu2 %v667_v17 }
  0xf0   : > { %v477_v19 = vpop.f32.mrf.mxu0  ;;  %v811_v59 = vpop.f32.mrf.mxu3 }
  0xf1   : > { %v542_v20 = vpop.f32.mrf.mxu1 }
  0xf2   : > { %v543_v21 = vadd.f32 %v542_v20, %v477_v19 }
  0xf4   : > { %v668_v23 = vmul.f32 %v627_v22, %v543_v21 }
  0xf6   : > { %766 = vmatmul.f32.gmra.mxu2 %v668_v23 }
  0xf8   : > { %v480_v25 = vpop.f32.mrf.mxu0  ;;  %v814_v60 = vpop.f32.mrf.mxu3 }
  0xf9   : > { %v545_v26 = vpop.f32.mrf.mxu1 }
  0xfa   : > { %v546_v27 = vadd.f32 %v545_v26, %v480_v25 }
  0xfc   : > { %v669_v29 = vmul.f32 %v632_v28, %v546_v27 }
  0xfe   : > { %769 = vmatmul.f32.gmra.mxu2 %v669_v29 }
 0x100   : > { %v483_v31 = vpop.f32.mrf.mxu0  ;;  %v817_v3 = vpop.f32.mrf.mxu3 }
 0x101   : > { %v548_v32 = vpop.f32.mrf.mxu1 }
 0x102   : > { %v549_v33 = vadd.f32 %v548_v32, %v483_v31 }
 0x104   : > { %v670_v35 = vmul.f32 %v637_v34, %v549_v33 }
 0x106   : > { %772 = vmatmul.f32.gmra.mxu2 %v670_v35 }
 0x108   : > { %v486_v37 = vpop.f32.mrf.mxu0  ;;  %v820_v9 = vpop.f32.mrf.mxu3 }
 0x109   : > { %v551_v38 = vpop.f32.mrf.mxu1 }
 0x10a   : > { %v552_v39 = vadd.f32 %v551_v38, %v486_v37 }
 0x10c   : > { %v671_v41 = vmul.f32 %v642_v40, %v552_v39 }
 0x10e   : > { %775 = vmatmul.f32.gmra.mxu2 %v671_v41 }
 0x110   : > { %v489_v42 = vpop.f32.mrf.mxu0  ;;  %v823_v15 = vpop.f32.mrf.mxu3 }
 0x111   : > { %v554_v43 = vpop.f32.mrf.mxu1 }
 0x112   : > { %v555_v44 = vadd.f32 %v554_v43, %v489_v42 }
 0x114   : > { %v672_v47 = vmul.f32 %v647_v46, %v555_v44 }
 0x116   : > { %778 = vmatmul.f32.gmra.mxu2 %v672_v47 }
 0x118   : > { %v492_v48 = vpop.f32.mrf.mxu0  ;;  %v826_v21 = vpop.f32.mrf.mxu3 }
 0x119   : > { %v557_v49 = vpop.f32.mrf.mxu1 }
 0x11a   : > { %v558_v50 = vadd.f32 %v557_v49, %v492_v48 }
 0x11c   : > { %v673_v53 = vmul.f32 %v652_v51, %v558_v50 }
 0x11e   : > { %781 = vmatmul.f32.gmra.mxu2 %v673_v53 }
 0x120   : > { %v495_v54 = vpop.f32.mrf.mxu0  ;;  %v829_v27 = vpop.f32.mrf.mxu3 }
 0x121   : > { %v560_v55 = vpop.f32.mrf.mxu1 }
 0x122   : > { %v561_v56 = vadd.f32 %v560_v55, %v495_v54 }
 0x124   : > { %v674_v58 = vmul.f32 %v657_v57, %v561_v56 }
 0x126   : > { %784 = vmatmul.f32.gmra.mxu2 %v674_v58 }
 0x128   : > { %v832_v33 = vpop.f32.mrf.mxu3 }
 0x130   : > { %v835_v39 = vpop.f32.mrf.mxu3 }
 0x131   : > { %v740_v62 = vpop.f32.mrf.mxu2 }
 0x132   : > { %v806_v63 = vadd.f32 %v805_v45, %v740_v62 }
 0x134   : > { %v857_v0 = vadd.f32 %v1326_v61, %v806_v63 }
 0x136   : > { %v873_v1 = vmax.f32 %v857_v0, 0.0 }
 0x138   : > { %889 = vst [vmem:[%s1333_s29] sm:$0xff] %v873_v1  ;;  %v838_v45 = vpop.f32.mrf.mxu3 }
 0x139   : > { %v743_v2 = vpop.f32.mrf.mxu2 }
 0x13a   : > { %v809_v4 = vadd.f32 %v808_v52, %v743_v2 }
 0x13c   : > { %v858_v5 = vadd.f32 %v1326_v61, %v809_v4 }
 0x13e   : > { %v874_v6 = vmax.f32 %v858_v5, 0.0 }
 0x140   : > { %890 = vst [vmem:[%s1333_s29 + $0x8] sm:$0xff] %v874_v6  ;;  %v841_v51 = vpop.f32.mrf.mxu3 }
 0x141   : > { %v746_v7 = vpop.f32.mrf.mxu2 }
 0x142   : > { %v812_v8 = vadd.f32 %v811_v59, %v746_v7 }
 0x144   : > { %v859_v10 = vadd.f32 %v1326_v61, %v812_v8 }
 0x146   : > { %v875_v11 = vmax.f32 %v859_v10, 0.0 }
 0x148   : > { %891 = vst [vmem:[%s1333_s29 + $0x10] sm:$0xff] %v875_v11  ;;  %v844_v57 = vpop.f32.mrf.mxu3 }
 0x149   : > { %v749_v12 = vpop.f32.mrf.mxu2 }
 0x14a   : > { %v815_v13 = vadd.f32 %v814_v60, %v749_v12 }
 0x14c   : > { %v860_v14 = vadd.f32 %v1326_v61, %v815_v13 }
 0x14e   : > { %v876_v16 = vmax.f32 %v860_v14, 0.0 }
 0x150   : > { %892 = vst [vmem:[%s1333_s29 + $0x18] sm:$0xff] %v876_v16  ;;  %v847_v0 = vpop.f32.mrf.mxu3 }
 0x151   : > { %v752_v17 = vpop.f32.mrf.mxu2 }
 0x152   : > { %v818_v18 = vadd.f32 %v817_v3, %v752_v17 }
 0x154   : > { %v861_v19 = vadd.f32 %v1326_v61, %v818_v18 }
 0x156   : > { %v877_v20 = vmax.f32 %v861_v19, 0.0 }
 0x158   : > { %893 = vst [vmem:[%s1333_s29 + $0x20] sm:$0xff] %v877_v20  ;;  %v850_v6 = vpop.f32.mrf.mxu3 }
 0x159   : > { %v755_v22 = vpop.f32.mrf.mxu2 }
 0x15a   : > { %v821_v23 = vadd.f32 %v820_v9, %v755_v22 }
 0x15c   : > { %v862_v24 = vadd.f32 %v1326_v61, %v821_v23 }
 0x15e   : > { %v878_v25 = vmax.f32 %v862_v24, 0.0 }
 0x160   : > { %894 = vst [vmem:[%s1333_s29 + $0x28] sm:$0xff] %v878_v25 }
 0x161   : > { %v758_v26 = vpop.f32.mrf.mxu2 }
 0x162   : > { %v824_v28 = vadd.f32 %v823_v15, %v758_v26 }
 0x164   : > { %v863_v29 = vadd.f32 %v1326_v61, %v824_v28 }
 0x166   : > { %v879_v30 = vmax.f32 %v863_v29, 0.0 }
 0x168   : > { %895 = vst [vmem:[%s1333_s29 + $0x30] sm:$0xff] %v879_v30 }
 0x169   : > { %v761_v31 = vpop.f32.mrf.mxu2 }
 0x16a   : > { %v827_v32 = vadd.f32 %v826_v21, %v761_v31 }
 0x16c   : > { %v864_v34 = vadd.f32 %v1326_v61, %v827_v32 }
 0x16e   : > { %v880_v35 = vmax.f32 %v864_v34, 0.0 }
 0x170   : > { %896 = vst [vmem:[%s1333_s29 + $0x38] sm:$0xff] %v880_v35 }
 0x171   : > { %v764_v36 = vpop.f32.mrf.mxu2 }
 0x172   : > { %v830_v37 = vadd.f32 %v829_v27, %v764_v36 }
 0x174   : > { %v865_v38 = vadd.f32 %v1326_v61, %v830_v37 }
 0x176   : > { %v881_v40 = vmax.f32 %v865_v38, 0.0 }
 0x178   : > { %897 = vst [vmem:[%s1333_s29 + $0x40] sm:$0xff] %v881_v40 }
 0x179   : > { %v767_v41 = vpop.f32.mrf.mxu2 }
 0x17a   : > { %v833_v42 = vadd.f32 %v832_v33, %v767_v41 }
 0x17c   : > { %v866_v43 = vadd.f32 %v1326_v61, %v833_v42 }
 0x17e   : > { %v882_v44 = vmax.f32 %v866_v43, 0.0 }
 0x180   : > { %898 = vst [vmem:[%s1333_s29 + $0x48] sm:$0xff] %v882_v44 }
 0x181   : > { %v770_v46 = vpop.f32.mrf.mxu2 }
 0x182   : > { %v836_v47 = vadd.f32 %v835_v39, %v770_v46 }
 0x184   : > { %v867_v48 = vadd.f32 %v1326_v61, %v836_v47 }
 0x186   : > { %v883_v49 = vmax.f32 %v867_v48, 0.0 }
 0x188   : > { %899 = vst [vmem:[%s1333_s29 + $0x50] sm:$0xff] %v883_v49 }
 0x189   : > { %v773_v50 = vpop.f32.mrf.mxu2 }
 0x18a   : > { %v839_v52 = vadd.f32 %v838_v45, %v773_v50 }
 0x18c   : > { %v868_v53 = vadd.f32 %v1326_v61, %v839_v52 }
 0x18e   : > { %v884_v54 = vmax.f32 %v868_v53, 0.0 }
 0x190   : > { %900 = vst [vmem:[%s1333_s29 + $0x58] sm:$0xff] %v884_v54 }
 0x191   : > { %v776_v55 = vpop.f32.mrf.mxu2 }
 0x192   : > { %v842_v56 = vadd.f32 %v841_v51, %v776_v55 }
 0x194   : > { %v869_v58 = vadd.f32 %v1326_v61, %v842_v56 }
 0x196   : > { %v885_v59 = vmax.f32 %v869_v58, 0.0 }
 0x198   : > { %901 = vst [vmem:[%s1333_s29 + $0x60] sm:$0xff] %v885_v59 }
 0x199   : > { %v779_v60 = vpop.f32.mrf.mxu2 }
 0x19a   : > { %v845_v62 = vadd.f32 %v844_v57, %v779_v60 }
 0x19c   : > { %v870_v63 = vadd.f32 %v1326_v61, %v845_v62 }
 0x19e   : > { %v886_v1 = vmax.f32 %v870_v63, 0.0 }
 0x1a0   : > { %902 = vst [vmem:[%s1333_s29 + $0x68] sm:$0xff] %v886_v1 }
 0x1a1   : > { %v782_v2 = vpop.f32.mrf.mxu2 }
 0x1a2   : > { %v848_v3 = vadd.f32 %v847_v0, %v782_v2 }
 0x1a4   : > { %v871_v4 = vadd.f32 %v1326_v61, %v848_v3 }
 0x1a6   : > { %v887_v5 = vmax.f32 %v871_v4, 0.0 }
 0x1a8   : > { %903 = vst [vmem:[%s1333_s29 + $0x70] sm:$0xff] %v887_v5 }
 0x1a9   : > { %v785_v7 = vpop.f32.mrf.mxu2 }
 0x1aa   : > { %v851_v8 = vadd.f32 %v850_v6, %v785_v7 }
 0x1ac   : > { %v872_v9 = vadd.f32 %v1326_v61, %v851_v8 }
 0x1ae   : > { %v888_v10 = vmax.f32 %v872_v9, 0.0 }
 0x1b0   : > { %904 = vst [vmem:[%s1333_s29 + $0x78] sm:$0xff] %v888_v10 }
 0x1b1 PF: > { %s17_s24 = sadd.s32 1, %s1021_s24  }
 0x1b2   : > { %p14_p5 = scmp.ge.s32.totalorder %s17_s24, 4  }
 0x1b4   :  { %16 = sbr.rel (!%p14_p5) target bundleno = 1 (0x1), region = 84 }

</bundles_post_ra>
